<compile_context>
chip_gen: v6e
topology: v6e:2x2x1
jax: 0.10.0
libtpu: 0.0.40
codegen_flags: <defaults>
</compile_context>

<pallas_src>
import jax
import jax.numpy as jnp
from jax.experimental import pallas as pl
from jax.experimental.pallas import tpu as pltpu


# ----------------------------------------------------------------------------
# Shared MLP kernel body, channels-on-sublanes layout.
#   x:  [C, TN]  (f32 streamed; cast to bf16 for the MXU inside the kernel)
#   h = softplus(W1 @ x + b1)          W1: [H, C]   (Softplus beta=1, thr=20)
#   y = W23 @ h + b23                  W23 = W3 @ W2, b23 = W3 b2 + b3 (exact)
# Used by both the voxel (2-D grid, batch dim squeezed) and point (1-D grid)
# pallas_calls -- the in-kernel refs are [C, TN] / [out_ch, TN] in both cases.
# ----------------------------------------------------------------------------
def _occ_mlp_kernel(x_ref, w1_ref, b1_ref, w23_ref, b23_ref, o_ref):
    x = x_ref[...].astype(jnp.bfloat16)                           # [C, TN]
    h = jnp.dot(w1_ref[...], x, preferred_element_type=jnp.float32)
    h = h + b1_ref[...]                                           # [H, TN] f32
    # PyTorch Softplus(beta=1, threshold=20): linear above the threshold.
    # (exp may overflow to inf for huge h in the untaken branch; the where
    #  selects h there, so no NaN leaks -- keep the where, not a blend.)
    h = jnp.where(h > 20.0, h, jnp.log1p(jnp.exp(h)))
    y = jnp.dot(w23_ref[...], h.astype(jnp.bfloat16),
                preferred_element_type=jnp.float32)
    o_ref[...] = (y + b23_ref[...]).astype(o_ref.dtype)


def _vmem_limit_bytes(c, c_out, tn):
    """Rough live-VMEM estimate (double-buffered f32 in/out + intermediates),
    with headroom, clamped to v7x's 64 MiB physical VMEM."""
    per_col = 2 * c * 4 + 2 * c_out * 4 + c * 4 + c * 2 + c * 2 + c_out * 4
    est = int(1.5 * (per_col * tn + (c * c + c * c_out) * 2 + 64 * 1024))
    return max(min(est, 64 * 1024 * 1024), 32 * 1024 * 1024)


def _largest_dividing_tile(n, target, align=128):
    """Largest multiple of `align` that divides n and is <= target (or None)."""
    t = (min(target, n) // align) * align
    while t >= align:
        if n % t == 0:
            return t
        t -= align
    return None


# ----------------------------------------------------------------------------
# Voxel path: [B, C, XYZ] (f32) -> [B, out_ch, XYZ] (f32), 2-D grid (B, XYZ//tn)
# ----------------------------------------------------------------------------
def occ_mlp_voxels_pallas(vox_bcn, w1, b1, w23, b23, *, tn_target=8192):
    B, C, N = vox_bcn.shape
    c_out = w23.shape[0]

    tn = _largest_dividing_tile(N, tn_target)
    if tn is None:
        # Rare irregular grid: fall back to padding the flattened voxel axis.
        tn = min(max(tn_target, 128), pl.cdiv(N, 128) * 128)
        n_pad = pl.cdiv(N, tn) * tn
        vox_bcn = jnp.pad(vox_bcn, ((0, 0), (0, 0), (0, n_pad - N)))
    else:
        n_pad = N
    nblk = n_pad // tn

    # v7x megacore: keep at least two grid steps when possible so both
    # TensorCores get work (harmless on single-TC v5e/v6e).
    if B * nblk < 2 and tn % 256 == 0:
        tn //= 2
        nblk = n_pad // tn

    const = lambda shape: pl.BlockSpec(shape, lambda b, i: (0, 0))

    out = pl.pallas_call(
        _occ_mlp_kernel,
        out_shape=jax.ShapeDtypeStruct((B, c_out, n_pad), jnp.float32),
        grid_spec=pltpu.PrefetchScalarGridSpec(
            num_scalar_prefetch=0,
            grid=(B, nblk),
            in_specs=[
                pl.BlockSpec((pl.Squeezed(), C, tn), lambda b, i: (b, 0, i)),
                const(w1.shape), const(b1.shape),          # layer 1 (resident)
                const(w23.shape), const(b23.shape),        # fused layers 2+3
            ],
            out_specs=pl.BlockSpec((pl.Squeezed(), c_out, tn),
                                   lambda b, i: (b, 0, i)),
        ),
        compiler_params=pltpu.CompilerParams(
            dimension_semantics=("parallel", "parallel"),
            vmem_limit_bytes=_vmem_limit_bytes(C, c_out, tn)),
    )(vox_bcn, w1, b1, w23, b23)

    return out[:, :, :N]


# ----------------------------------------------------------------------------
# Point path: [C, P] (f32) -> [out_ch, P] (f32), 1-D grid.
# ----------------------------------------------------------------------------
def occ_mlp_points_pallas(x_cn, w1, b1, w23, b23, *, tn_target=8192):
    C, N = x_cn.shape
    c_out = w23.shape[0]

    tn = min(max(tn_target, 128), pl.cdiv(N, 128) * 128)
    n_pad = pl.cdiv(N, tn) * tn
    if n_pad != N:
        x_cn = jnp.pad(x_cn, ((0, 0), (0, n_pad - N)))

    const = lambda shape: pl.BlockSpec(shape, lambda i: (0, 0))

    out = pl.pallas_call(
        _occ_mlp_kernel,
        out_shape=jax.ShapeDtypeStruct((c_out, n_pad), jnp.float32),
        grid_spec=pltpu.PrefetchScalarGridSpec(
            num_scalar_prefetch=0,
            grid=(n_pad // tn,),
            in_specs=[
                pl.BlockSpec((C, tn), lambda i: (0, i)),
                const(w1.shape), const(b1.shape),
                const(w23.shape), const(b23.shape),
            ],
            out_specs=pl.BlockSpec((c_out, tn), lambda i: (0, i)),
        ),
        compiler_params=pltpu.CompilerParams(
            dimension_semantics=("parallel",),
            vmem_limit_bytes=_vmem_limit_bytes(C, c_out, tn)),
    )(x_cn, w1, b1, w23, b23)

    return out[:, :N]


# ----------------------------------------------------------------------------
# Trilinear grid sample matching F.grid_sample(..., mode='bilinear',
# padding_mode='zeros', align_corners=False) on a 5-D input [1, C, D, H, W]
# with grid [1, 1, 1, P, 3]; grid last dim = (x -> W, y -> H, z -> D).
#   vol:    [C, D, H, W]  (here D=X, H=Y, W=Z, exactly as the PyTorch module
#           feeds voxel_feat[b] of shape [C, X, Y, Z] to grid_sample)
#   coords: [P, 3] normalized
#   returns [C, P]
# TODO(synk): for very large LiDAR point counts, replace the jnp.take gather
# with a scalar-prefetch Pallas gather (corner indices in SMEM driving
# make_async_copy over the [C, D*H*W] volume); plain-JAX glue is fine here.
# ----------------------------------------------------------------------------
def trilinear_grid_sample(vol, coords):
    C, D, H, W = vol.shape
    P = coords.shape[0]

    x = ((coords[:, 0] + 1.0) * W - 1.0) * 0.5
    y = ((coords[:, 1] + 1.0) * H - 1.0) * 0.5
    z = ((coords[:, 2] + 1.0) * D - 1.0) * 0.5

    x0 = jnp.floor(x); y0 = jnp.floor(y); z0 = jnp.floor(z)
    wx1 = x - x0; wy1 = y - y0; wz1 = z - z0
    wx0 = 1.0 - wx1; wy0 = 1.0 - wy1; wz0 = 1.0 - wz1

    corners = [
        (z0,       y0,       x0,       wz0 * wy0 * wx0),
        (z0,       y0,       x0 + 1.0, wz0 * wy0 * wx1),
        (z0,       y0 + 1.0, x0,       wz0 * wy1 * wx0),
        (z0,       y0 + 1.0, x0 + 1.0, wz0 * wy1 * wx1),
        (z0 + 1.0, y0,       x0,       wz1 * wy0 * wx0),
        (z0 + 1.0, y0,       x0 + 1.0, wz1 * wy0 * wx1),
        (z0 + 1.0, y0 + 1.0, x0,       wz1 * wy1 * wx0),
        (z0 + 1.0, y0 + 1.0, x0 + 1.0, wz1 * wy1 * wx1),
    ]

    flat_idx, weights = [], []
    for zi, yi, xi, w in corners:
        valid = ((xi >= 0) & (xi <= W - 1) &
                 (yi >= 0) & (yi <= H - 1) &
                 (zi >= 0) & (zi <= D - 1))
        xi_c = jnp.clip(xi, 0, W - 1).astype(jnp.int32)
        yi_c = jnp.clip(yi, 0, H - 1).astype(jnp.int32)
        zi_c = jnp.clip(zi, 0, D - 1).astype(jnp.int32)
        flat_idx.append((zi_c * H + yi_c) * W + xi_c)
        weights.append(w * valid.astype(vol.dtype))

    idx = jnp.stack(flat_idx, axis=0).reshape(-1)            # [8*P]
    wts = jnp.stack(weights, axis=0)                         # [8, P]
    vals = jnp.take(vol.reshape(C, D * H * W), idx, axis=1)  # [C, 8*P]
    return jnp.einsum("ckp,kp->cp", vals.reshape(C, 8, P), wts)


# ----------------------------------------------------------------------------
# SharedOccHead forward
# ----------------------------------------------------------------------------
POINT_CLOUD_RANGE = jnp.array([-51.2, -51.2, -5.0, 51.2, 51.2, 3.0],
                              dtype=jnp.float32)


def init_params(key, in_channels, out_channel):
    """Deterministic init of point_occ_mlp params (PyTorch layout: W [out,in])."""
    hidden = in_channels
    k1, k2, k3 = jax.random.split(key, 3)
    scale = 0.05
    return {
        "w1": scale * jax.random.normal(k1, (hidden, in_channels), jnp.float32),
        "b1": jnp.full((hidden,), 0.01, jnp.float32),
        "w2": scale * jax.random.normal(k2, (hidden, hidden), jnp.float32),
        "b2": jnp.full((hidden,), -0.01, jnp.float32),
        "w3": scale * jax.random.normal(k3, (out_channel, hidden), jnp.float32),
        "b3": jnp.zeros((out_channel,), jnp.float32),
    }


def _fuse_mlp_params(params):
    """Fold layers 2+3 (exact: no nonlinearity between them) and cast for MXU."""
    w1 = params["w1"].astype(jnp.bfloat16)                    # [H, C]
    b1 = params["b1"].astype(jnp.float32)[:, None]            # [H, 1]
    w23 = jnp.dot(params["w3"], params["w2"])                 # [out, H]
    b23 = jnp.dot(params["w3"], params["b2"]) + params["b3"]  # [out]
    return w1, b1, w23.astype(jnp.bfloat16), b23.astype(jnp.float32)[:, None]


def shared_occ_head_forward(voxel_feats, points, params, *, tn=8192):
    """
    voxel_feats: list (num_level=1) of [B, C, X, Y, Z] float32 arrays.
    points:      list of per-batch point clouds [P_b, 4] (x, y, z, ...).
    Returns dict with 'output_voxels' (list of [B, out_ch, X, Y, Z]) and
    'output_points' (list of [P_b, out_ch]).
    """
    pc_min = POINT_CLOUD_RANGE[:3]
    pc_rng = POINT_CLOUD_RANGE[3:] - pc_min

    batch_voxel = voxel_feats[-1]
    B, C, X, Y, Z = batch_voxel.shape

    # TODO(synk): sample_img_feats / feature_sampling branch (2D grid_sample +
    # data-dependent scatter-add onto joint_feats) is skipped — default config
    # has sampling_img_feats=False.

    w1, b1, w23, b23 = _fuse_mlp_params(params)
    out_ch = w23.shape[0]

    # ---- voxels: [B, C, XYZ] (free reshape) -> [B, out_ch, XYZ] directly ----
    vox_flat = batch_voxel.reshape(B, C, X * Y * Z)
    vox_out = occ_mlp_voxels_pallas(vox_flat, w1, b1, w23, b23, tn_target=tn)
    output_voxels = vox_out.reshape(B, out_ch, X, Y, Z)

    # ---- points: tiny second pallas_call (keeps the voxel slab copy-free) ---
    point_feats, point_counts = [], []
    for b in range(B):
        pts = points[b][:, :3].astype(jnp.float32)
        norm = (pts - pc_min) / pc_rng * 2.0 - 1.0            # [P, 3] (x,y,z)
        pf = jnp.zeros((C, pts.shape[0]), jnp.float32)
        for voxel_feat in voxel_feats:                        # num_level sum
            pf = pf + trilinear_grid_sample(voxel_feat[b], norm)
        point_feats.append(pf)
        point_counts.append(pts.shape[0])

    pts_cn = jnp.concatenate(point_feats, axis=1)             # [C, P_total]
    pts_out = occ_mlp_points_pallas(pts_cn, w1, b1, w23, b23, tn_target=tn)

    output_points = []
    off = 0
    for p in point_counts:
        output_points.append(pts_out[:, off:off + p].T)       # [P_b, out_ch]
        off += p

    return {"output_voxels": [output_voxels], "output_points": output_points}


if __name__ == "__main__":
    key = jax.random.PRNGKey(0)
    k_feat, k_pts, k_par = jax.random.split(key, 3)

    # Small synthetic shapes consistent with the module (in_channels = 32).
    B, C, X, Y, Z = 2, 32, 16, 16, 8
    out_channel = 16
    point_counts = [100, 73]          # ragged per-batch point clouds

    voxel_feats = [jax.random.normal(k_feat, (B, C, X, Y, Z), jnp.float32)]

    pc_lo = jnp.array([-51.2, -51.2, -5.0], jnp.float32)
    pc_hi = jnp.array([51.2, 51.2, 3.0], jnp.float32)
    pts_keys = jax.random.split(k_pts, B)
    points = []
    for b in range(B):
        u = jax.random.uniform(pts_keys[b], (point_counts[b], 3), jnp.float32)
        xyz = pc_lo + u * (pc_hi - pc_lo)
        intensity = jnp.zeros((point_counts[b], 1), jnp.float32)
        points.append(jnp.concatenate([xyz, intensity], axis=1))

    params = init_params(k_par, C, out_channel)

    # Production default tn=8192 (sweep 8192-32768 on v5e/v6e, 8192-16384 on
    # v7x); the wrappers auto-cap the tile to the actual voxel/point counts,
    # so the small test still runs a multi-step (B, XYZ//tn) grid.
    res = shared_occ_head_forward(voxel_feats, points, params, tn=8192)
    jax.block_until_ready(res["output_voxels"][0])
    for op in res["output_points"]:
        jax.block_until_ready(op)

    assert res["output_voxels"][0].shape == (B, out_channel, X, Y, Z)
    assert all(op.shape == (pc, out_channel)
               for op, pc in zip(res["output_points"], point_counts))
    print("KERNEL_OK")
</pallas_src>

<mosaic_0001>
module attributes {stable_mosaic.version = 11 : i64} {
  func.func @_occ_mlp_kernel(%arg0: i32, %arg1: i32, %arg2: memref<1x32x2048xf32, #tpu.memory_space<vmem>>, %arg3: memref<32x32xbf16, #tpu.memory_space<vmem>>, %arg4: memref<32x1xf32, #tpu.memory_space<vmem>>, %arg5: memref<16x32xbf16, #tpu.memory_space<vmem>>, %arg6: memref<16x1xf32, #tpu.memory_space<vmem>>, %arg7: memref<1x16x2048xf32, #tpu.memory_space<vmem>>) attributes {dimension_semantics = [#tpu.dimension_semantics<parallel>, #tpu.dimension_semantics<parallel>], iteration_bounds = array<i64: 2, 1>, scalar_prefetch = 0 : i64, scratch_operands = 0 : i64, tpu.core_type = #tpu.core_type<tc>, window_params = [{transform_indices = @transform_0, window_bounds = array<i64: 1, 32, 2048>}, {pipeline_mode = #tpu.pipeline_mode<synchronous>, transform_indices = @transform_1, window_bounds = array<i64: 32, 32>}, {pipeline_mode = #tpu.pipeline_mode<synchronous>, transform_indices = @transform_2, window_bounds = array<i64: 32, 1>}, {pipeline_mode = #tpu.pipeline_mode<synchronous>, transform_indices = @transform_3, window_bounds = array<i64: 16, 32>}, {pipeline_mode = #tpu.pipeline_mode<synchronous>, transform_indices = @transform_4, window_bounds = array<i64: 16, 1>}, {transform_indices = @transform_5, window_bounds = array<i64: 1, 16, 2048>}]} {
    %c0 = arith.constant 0 : index
    %c0_0 = arith.constant 0 : index
    %c0_1 = arith.constant 0 : index
    %0 = vector.load %arg2[%c0, %c0_0, %c0_1] : memref<1x32x2048xf32, #tpu.memory_space<vmem>>, vector<1x32x2048xf32>
    %1 = vector.shape_cast %0 : vector<1x32x2048xf32> to vector<32x2048xf32>
    %2 = arith.truncf %1 : vector<32x2048xf32> to vector<32x2048xbf16>
    %c0_2 = arith.constant 0 : index
    %c0_3 = arith.constant 0 : index
    %3 = vector.load %arg3[%c0_2, %c0_3] : memref<32x32xbf16, #tpu.memory_space<vmem>>, vector<32x32xbf16>
    %cst = arith.constant dense<0.000000e+00> : vector<32x2048xf32>
    %4 = tpu.matmul %3, %2, %cst {dimension_numbers = #tpu.dot_dimension_numbers<[1], [0], [0], [1], [0, 0, 1, 1], [], []>} : vector<32x32xbf16>, vector<32x2048xbf16>, vector<32x2048xf32> -> vector<32x2048xf32>
    %c0_4 = arith.constant 0 : index
    %c0_5 = arith.constant 0 : index
    %5 = vector.load %arg4[%c0_4, %c0_5] : memref<32x1xf32, #tpu.memory_space<vmem>>, vector<32x1xf32>
    %6 = vector.broadcast %5 : vector<32x1xf32> to vector<32x2048xf32>
    %7 = arith.addf %4, %6 : vector<32x2048xf32>
    %cst_6 = arith.constant 2.000000e+01 : f32
    %8 = vector.broadcast %cst_6 : f32 to vector<32x2048xf32>
    %9 = arith.cmpf ogt, %7, %8 : vector<32x2048xf32>
    %10 = math.exp %7 : vector<32x2048xf32>
    %11 = math.log1p %10 : vector<32x2048xf32>
    %12 = arith.select %9, %7, %11 : vector<32x2048xi1>, vector<32x2048xf32>
    %c0_7 = arith.constant 0 : index
    %c0_8 = arith.constant 0 : index
    %13 = vector.load %arg5[%c0_7, %c0_8] : memref<16x32xbf16, #tpu.memory_space<vmem>>, vector<16x32xbf16>
    %14 = arith.truncf %12 : vector<32x2048xf32> to vector<32x2048xbf16>
    %cst_9 = arith.constant dense<0.000000e+00> : vector<16x2048xf32>
    %15 = tpu.matmul %13, %14, %cst_9 {dimension_numbers = #tpu.dot_dimension_numbers<[1], [0], [0], [1], [0, 0, 1, 1], [], []>} : vector<16x32xbf16>, vector<32x2048xbf16>, vector<16x2048xf32> -> vector<16x2048xf32>
    %c0_10 = arith.constant 0 : index
    %c0_11 = arith.constant 0 : index
    %16 = vector.load %arg6[%c0_10, %c0_11] : memref<16x1xf32, #tpu.memory_space<vmem>>, vector<16x1xf32>
    %17 = vector.broadcast %16 : vector<16x1xf32> to vector<16x2048xf32>
    %18 = arith.addf %15, %17 : vector<16x2048xf32>
    %c0_12 = arith.constant 0 : index
    %c0_13 = arith.constant 0 : index
    %c0_14 = arith.constant 0 : index
    %19 = vector.load %arg7[%c0_12, %c0_13, %c0_14] : memref<1x16x2048xf32, #tpu.memory_space<vmem>>, vector<1x16x2048xf32>
    %20 = vector.shape_cast %19 : vector<1x16x2048xf32> to vector<16x2048xf32>
    %21 = vector.shape_cast %18 : vector<16x2048xf32> to vector<1x16x2048xf32>
    tpu.vector_store %arg7[%c0_12, %c0_13, %c0_14], %21 {strides = array<i32>} : memref<1x16x2048xf32, #tpu.memory_space<vmem>>, vector<1x16x2048xf32>,
    return
  }
  func.func @transform_0(%arg0: i32, %arg1: i32) -> (i32, i32, i32) {
    %c0_i32 = arith.constant 0 : i32
    %c0_i32_0 = arith.constant 0 : i32
    return %arg0, %c0_i32, %arg1 : i32, i32, i32
  }
  func.func @transform_1(%arg0: i32, %arg1: i32) -> (i32, i32) {
    %c0_i32 = arith.constant 0 : i32
    %c0_i32_0 = arith.constant 0 : i32
    %c0_i32_1 = arith.constant 0 : i32
    return %c0_i32, %c0_i32_0 : i32, i32
  }
  func.func @transform_2(%arg0: i32, %arg1: i32) -> (i32, i32) {
    %c0_i32 = arith.constant 0 : i32
    %c0_i32_0 = arith.constant 0 : i32
    %c0_i32_1 = arith.constant 0 : i32
    return %c0_i32, %c0_i32_0 : i32, i32
  }
  func.func @transform_3(%arg0: i32, %arg1: i32) -> (i32, i32) {
    %c0_i32 = arith.constant 0 : i32
    %c0_i32_0 = arith.constant 0 : i32
    %c0_i32_1 = arith.constant 0 : i32
    return %c0_i32, %c0_i32_0 : i32, i32
  }
  func.func @transform_4(%arg0: i32, %arg1: i32) -> (i32, i32) {
    %c0_i32 = arith.constant 0 : i32
    %c0_i32_0 = arith.constant 0 : i32
    %c0_i32_1 = arith.constant 0 : i32
    return %c0_i32, %c0_i32_0 : i32, i32
  }
  func.func @transform_5(%arg0: i32, %arg1: i32) -> (i32, i32, i32) {
    %c0_i32 = arith.constant 0 : i32
    %c0_i32_0 = arith.constant 0 : i32
    return %arg0, %c0_i32, %arg1 : i32, i32, i32
  }
}

</mosaic_0001>

<bundles_post_ra>
// kernel: tpu_custom_call.1
= control target key start
LH: loop header
LB: loop body
LE: loop exit
PB: predicated region body
PF: predicated region fallthrough
CT: control target
= control target key end

     0   :  { %10 = vsyncpa [#allocation3], 0  ;;  %s4583_s0 = inlined_call_operand.hbm [shape: f32[2,32,2048], index: 0, kind: input, shape index: {}]   ;;  %s4584_s1 = inlined_call_operand.vmem [shape: bf16[32,32], index: 1, kind: input, shape index: {}]   ;;  %s4585_s2 = inlined_call_operand.vmem [shape: f32[32,1], index: 2, kind: input, shape index: {}]   ;;  %s4586_s3 = inlined_call_operand.vmem [shape: bf16[16,32], index: 3, kind: input, shape index: {}]   ;;  %s4587_s4 = inlined_call_operand.vmem [shape: f32[16,1], index: 4, kind: input, shape index: {}]   ;;  %s4588_s5 = inlined_call_operand.hbm [shape: f32[2,16,2048], index: 5, kind: output, shape index: {}]  }
   0x1   :  { %12 = vsyncpa [#allocation3 + $0x1], 0 }
   0x2   :  { %13 = vsyncpa [#allocation4], 0 }
   0x3   :  { %15 = vsyncpa [#allocation4 + $0x1], 0  ;;  %s2713_s18 = smov 0   ;;  %s2715_s19 = smov 0  }
   0x4   :  { %s2717_s20 = smov 0   ;;  %s2719_s21 = smov 0  }
   0x5   :  { %s2721_s22 = smov 0   ;;  %s2723_s23 = smov 0  }
   0x6 LB: > { %s2194_s24 = sadd.s32 4294967295, %s2674_s23   ;;  %s2195_s25 = sadd.s32 4294967294, %s2674_s23   ;;  %s2674_s23 = sphi %s2723_s23, %s21_s23   ;;  %s2670_s22 = sphi %s2721_s22, %s4957_s22   ;;  %s2666_s21 = sphi %s2719_s21, %s4956_s21   ;;  %s2662_s20 = sphi %s2717_s20, %s4955_s20   ;;  %s2658_s19 = sphi %s2715_s19, %s4954_s19   ;;  %s2654_s18 = sphi %s2713_s18, %s4953_s18  }
   0x7   : > { %s33_s26 = sadd.s32 1, %s2670_s22  ;;  %s42_s27 = sadd.s32 1, %s2662_s20 }
   0x8   : > { %p35_p0 = scmp.ge.s32.totalorder %s33_s26, 2  ;;  %p49_p1 = scmp.ne.s32.totalorder %s2662_s20, %s2658_s19 }
   0x9   : > { %p50_p2 = scmp.eq.s32.totalorder %s2674_s23, 0  ;;  %p55_p3 = scmp.ne.s32.totalorder %s2658_s19, %s2654_s18 }
   0xa   : > { %s4959_s26 = smov (%p35_p0, %s33_s26), 0  ;;  %p56_p5 = scmp.eq.s32.totalorder %s2194_s24, 0 }
   0xb   : > { %p2754_p4 = por %p50_p2, %p49_p1  ;;  %s37_s29 = ssub.s32 %s2670_s22, %s4959_s26 }
   0xc   : > { %p165_p6 = scmp.eq.s32.totalorder %s2194_s24, 1  ;;  %p40_p7 = scmp.eq.s32.totalorder %s37_s29, 0 }
   0xd   : > { %p2760_p8 = por %p56_p5, %p55_p3  ;;  %p171_p10 = scmp.eq.s32.totalorder %s2195_s25, 1 }
   0xe   : > { %p2764_p9 = por %p165_p6, %p49_p1  ;;  %p2250_p13 = scmp.lt.s32.totalorder %s2674_s23, 2 }
   0xf   : > { %s2769_s7 = scalar_select %p40_p7, %s2662_s20, %s42_s27  }
  0x10   : > { %p2771_p11 = por %p171_p10, %p55_p3  ;;  %s203_s9 = sand.u32 1, %s2662_s20  }
  0x11   : > { %s2198_s10 = sshll.u32 %s203_s9, 9  ;;  %s2236_s11 = sshll.u32 %s2670_s22, 13 }
  0x12   : > { %s215_s14 = scalar_lea.hbm %s4583_s0, %s2236_s11  ;;  %s207_s15 = scalar_lea.vmem [#allocation2], %s2198_s10 }
  0x13   : > { %s216_s16 = sshll.u32 %s207_s15, 4  ;;  %p2784_p0 = pnand %p2250_p13, %p2754_p4  ;;  %s217_s16 = int_to_ptr.vmem [resolvable:$true] %s216_s16 }
  0x14   : > { %p2201_p1 = scmp.ge.s32.totalorder %s2674_s23, 1  ;;  %s204_s24 = scalar_lea.sflag [#allocation3], %s203_s9 }
  0x15   : > { %p2568_p2 = pneg %p2784_p0  ;;  %s2579_s25 = scalar_lea.vmem %s217_s16, 8192 }
  0x16   : > { %p2580_p3 = scmp.ne.s32.totalorder %s217_s16, %s2579_s25  ;;  %s2676_s27 = smov [#allocation2]  }
  0x17   : > { %s2584_s29 = sshll.u32 %s2676_s27, 4  ;;  %s2585_s29 = int_to_ptr.vmem [resolvable:$false] %s2584_s29 }
  0x18   : > { %p2582_p5 = pnand %p2580_p3, %p2568_p2  ;;  %s2586_s10 = scalar_lea.vmem %s2585_s29, 16384 }
  0x19   : > { %p2587_p7 = scmp.lt.s32.totalorder %s217_s16, %s2585_s29  ;;  %p2588_p10 = scmp.lt.s32.totalorder %s2586_s10, %s2579_s25 }
  0x1a   : > { %p2583_p6 = pneg %p2582_p5 }
  0x1b   : > { %p2589_p12 = por %p2588_p10, %p2587_p7 }
  0x1d   : > { %p2590_p4 = pnand %p2589_p12, %p2583_p6 }
  0x1f   : > { %2593 = shalt.err (!%p2590_p4)
}
  0x20   : > { %s2677_s28 = smov 2048   ;;  %s2678_s9 = smov 128  }
  0x21   : > { %2245 = dma.hbm_to_vmem [thread:$0]  (!%p2784_p0), %s215_s14, 8192, %s217_s16, %s204_s24, %s2677_s28, %s2677_s28, %s2678_s9  }
  0x22   : > { %p224_p13 = scmp.lt.s32.totalorder %s2674_s23, 3 }
  0x24   : > { %p225_p2 = pnand %p2201_p1, %p224_p13 }
  0x26   : > { %228 = sbr.rel (%p225_p2) target bundleno = 712 (0x2c8), region = 40 }
  0x2b   : > { %s2797_s11 = sand.u32 1, %s2658_s19  }
  0x2c   : > { %s2202_s12 = sshll.u32 %s2797_s11, 9  ;;  %s231_s13 = scalar_lea.sflag [#allocation3], %s2797_s11 }
  0x2d   : > { %s2801_s15 = scalar_lea.vmem [#allocation2], %s2202_s12 }
  0x2e   : > { %2645 = dma.done.wait (%p2760_p8), %s231_s13, 8192  }
  0x2f   : > { %2647 = vsyncadd (%p2760_p8), %s231_s13, 4294959104  ;;  %v4589_v0 = vmov 0   ;;  %v297_v1 = vld [vmem:[%s2801_s15 + $0x108] sm:$0xff]  ;;  %v299_v3 = vld [vmem:[%s2801_s15 + $0x118] sm:$0xff]  ;;  %vm398_vm0 = vcmask 261120   ;;  %s2203_s24 = sshll.u32 %s2797_s11, 8 }
  0x30   : > { %437 = vmatprep.mubr.bf16.mxu0 %v4589_v0  ;;  %490 = vmatprep.mubr.bf16.mxu1 %v4589_v0  ;;  %v313_v2 = vld [vmem:[%s2801_s15 + $0x188] sm:$0xff]  ;;  %v315_v5 = vld [vmem:[%s2801_s15 + $0x198] sm:$0xff]  ;;  %v296_v6 = vld [vmem:[%s2801_s15 + $0x100] sm:$0xff]  ;;  %s4463_s25 = scalar_lea.vmem [#allocation5], %s2203_s24  ;;  %s2237_s27 = sshll.u32 %s2666_s21, 12 }
  0x31   : > { %2306 = vset.pattern.permute.xlu1 %v4589_v0  ;;  %2305 = vset.pattern.permute.xlu0 %v4589_v0  ;;  %v345_v4 = vpack.c.bf16 %v313_v2, %v297_v1  ;;  %v312_v7 = vld [vmem:[%s2801_s15 + $0x180] sm:$0xff]  ;;  %v347_v8 = vpack.c.bf16 %v315_v5, %v299_v3  ;;  %v298_v10 = vld [vmem:[%s2801_s15 + $0x110] sm:$0xff]  ;;  %v265_v12 = vld [vmem:[%s2801_s15 + $0x8] sm:$0xff]  ;;  %s2107_s29 = sshll.u32 %s4463_s25, 4  ;;  %s4530_s9 = scalar_lea.hbm %s4588_s5, %s2237_s27  ;;  %s4532_s29 = int_to_ptr.vmem [resolvable:$true] %s2107_s29 }
  0x32   : > { %v344_v9 = vpack.c.bf16 %v312_v7, %v296_v6  ;;  %v314_v11 = vld [vmem:[%s2801_s15 + $0x190] sm:$0xff]  ;;  %v281_v14 = vld [vmem:[%s2801_s15 + $0x88] sm:$0xff]  ;;  %v267_v15 = vld [vmem:[%s2801_s15 + $0x18] sm:$0xff]  ;;  %s2092_s21 = scalar_lea.sflag [#allocation4], %s2797_s11  ;;  %s2594_s12 = scalar_lea.vmem %s4532_s29, 4096 }
  0x33   : > { %417 = vmatprep.subr.bf16.mxu0 %v345_v4  ;;  %v346_v13 = vpack.c.bf16 %v314_v11, %v298_v10  ;;  %v283_v16 = vld [vmem:[%s2801_s15 + $0x98] sm:$0xff]  ;;  %470 = vmatprep.subr.bf16.mxu1 %v347_v8  ;;  %v329_v17 = vpack.c.bf16 %v281_v14, %v265_v12  ;;  %v264_v19 = vld [vmem:[%s2801_s15] sm:$0xff]  ;;  %v266_v21 = vld [vmem:[%s2801_s15 + $0x10] sm:$0xff]  ;;  %p2595_p8 = scmp.ne.s32.totalorder %s4532_s29, %s2594_s12  ;;  %s2680_s13 = smov [#allocation5]  }
  0x34   : > { %418 = vmatpush1.bf16.msra.mxu0 %v344_v9  ;;  %v331_v18 = vpack.c.bf16 %v283_v16, %v267_v15  ;;  %v280_v20 = vld [vmem:[%s2801_s15 + $0x80] sm:$0xff]  ;;  %v282_v23 = vld [vmem:[%s2801_s15 + $0x90] sm:$0xff]  ;;  %v301_v26 = vld [vmem:[%s2801_s15 + $0x128] sm:$0xff]  ;;  %s2598_s30 = sshll.u32 %s2680_s13, 4  ;;  %s2599_s30 = int_to_ptr.vmem [resolvable:$false] %s2598_s30 }
  0x35   : > { %471 = vmatpush1.bf16.msra.mxu1 %v346_v13  ;;  %v328_v22 = vpack.c.bf16 %v280_v20, %v264_v19  ;;  %419 = vmatprep.subr.bf16.mxu0 %v329_v17  ;;  %v330_v24 = vpack.c.bf16 %v282_v23, %v266_v21  ;;  %v2830_v25 = vld [vmem:[%s4584_s1] sm:$0xff]   ;;  %v317_v27 = vld [vmem:[%s2801_s15 + $0x1a8] sm:$0xff]  ;;  %v303_v29 = vld [vmem:[%s2801_s15 + $0x138] sm:$0xff]  ;;  %p2596_p12 = pnand %p2595_p8, %p2764_p9  ;;  %s2600_s14 = scalar_lea.vmem %s2599_s30, 8192 }
  0x36   : > { %472 = vmatprep.subr.bf16.mxu1 %v331_v18  ;;  %v349_v28 = vpack.c.bf16 %v317_v27, %v301_v26  ;;  %v319_v30 = vld [vmem:[%s2801_s15 + $0x1b8] sm:$0xff]  ;;  %v300_v31 = vld [vmem:[%s2801_s15 + $0x120] sm:$0xff]  ;;  %v302_v34 = vld [vmem:[%s2801_s15 + $0x130] sm:$0xff]  ;;  %p2601_p1 = scmp.lt.s32.totalorder %s4532_s29, %s2599_s30  ;;  %p2602_p3 = scmp.lt.s32.totalorder %s2600_s14, %s2594_s12 }
  0x37   : > { %v351_v32 = vpack.c.bf16 %v319_v30, %v303_v29  ;;  %v316_v33 = vld [vmem:[%s2801_s15 + $0x1a0] sm:$0xff]  ;;  %v318_v35 = vld [vmem:[%s2801_s15 + $0x1b0] sm:$0xff]  ;;  %v269_v38 = vld [vmem:[%s2801_s15 + $0x28] sm:$0xff]  ;;  %p2597_p0 = pneg %p2596_p12 }
  0x38   : > { %420 = vmatpush1.bf16.msra.mxu0 %v328_v22  ;;  %v348_v36 = vpack.c.bf16 %v316_v33, %v300_v31  ;;  %v350_v37 = vpack.c.bf16 %v318_v35, %v302_v34  ;;  %v285_v39 = vld [vmem:[%s2801_s15 + $0xa8] sm:$0xff]  ;;  %v271_v40 = vld [vmem:[%s2801_s15 + $0x38] sm:$0xff]  ;;  %v268_v43 = vld [vmem:[%s2801_s15 + $0x20] sm:$0xff]  ;;  %p2603_p5 = por %p2602_p3, %p2601_p1 }
  0x39   : > { %473 = vmatpush1.bf16.msra.mxu1 %v330_v24  ;;  %523 = vmatprep.subr.bf16.mxu0 %v349_v28  ;;  %v333_v41 = vpack.c.bf16 %v285_v39, %v269_v38  ;;  %v287_v42 = vld [vmem:[%s2801_s15 + $0xb8] sm:$0xff]  ;;  %v284_v44 = vld [vmem:[%s2801_s15 + $0xa0] sm:$0xff]  ;;  %v270_v47 = vld [vmem:[%s2801_s15 + $0x30] sm:$0xff] }
  0x3a   : > { %576 = vmatprep.subr.bf16.mxu1 %v351_v32  ;;  %v335_v45 = vpack.c.bf16 %v287_v42, %v271_v40  ;;  %v332_v46 = vpack.c.bf16 %v284_v44, %v268_v43  ;;  %v286_v48 = vld [vmem:[%s2801_s15 + $0xb0] sm:$0xff]  ;;  %v305_v49 = vld [vmem:[%s2801_s15 + $0x148] sm:$0xff]  ;;  %v307_v52 = vld [vmem:[%s2801_s15 + $0x158] sm:$0xff]  ;;  %p2604_p6 = pnand %p2603_p5, %p2597_p0 }
  0x3b   : > { %2206 = vmatmul.mubr.msk.bf16.vlgmr.msra.gmra.mxu0 %vm398_vm0, %v2830_v25  ;;  %v334_v50 = vpack.c.bf16 %v286_v48, %v270_v47  ;;  %v321_v51 = vld [vmem:[%s2801_s15 + $0x1c8] sm:$0xff]  ;;  %v323_v53 = vld [vmem:[%s2801_s15 + $0x1d8] sm:$0xff]  ;;  %v304_v57 = vld [vmem:[%s2801_s15 + $0x140] sm:$0xff] }
  0x3c   : > { %2208 = vmatmul.mubr.msk.bf16.vlgmr.msra.gmra.mxu1 %vm398_vm0, %v2830_v25  ;;  %524 = vmatpush1.bf16.msra.mxu0 %v348_v36  ;;  %v353_v54 = vpack.c.bf16 %v321_v51, %v305_v49  ;;  %v355_v55 = vpack.c.bf16 %v323_v53, %v307_v52  ;;  %v2861_v56 = vld [vmem:[%s4584_s1 + $0x8] sm:$0xff]   ;;  %v320_v58 = vld [vmem:[%s2801_s15 + $0x1c0] sm:$0xff]  ;;  %v306_v59 = vld [vmem:[%s2801_s15 + $0x150] sm:$0xff] }
  0x3d   : > { %577 = vmatpush1.bf16.msra.mxu1 %v350_v37  ;;  %447 = vmatprep.mubr.bf16.mxu0 %v4589_v0  ;;  %v322_v60 = vld [vmem:[%s2801_s15 + $0x1d0] sm:$0xff]  ;;  %v273_v61 = vld [vmem:[%s2801_s15 + $0x48] sm:$0xff]  ;;  %v275_v63 = vld [vmem:[%s2801_s15 + $0x58] sm:$0xff]  ;;  %v352_v3 = vpack.c.bf16 %v320_v58, %v304_v57 }
  0x3e   : > { %500 = vmatprep.mubr.bf16.mxu1 %v4589_v0  ;;  %525 = vmatprep.subr.bf16.mxu0 %v333_v41  ;;  %v289_v62 = vld [vmem:[%s2801_s15 + $0xc8] sm:$0xff]  ;;  %v291_v1 = vld [vmem:[%s2801_s15 + $0xd8] sm:$0xff]  ;;  %v364_v2 = vld [vmem:[%s4585_s2] sm:$0xff]  ;;  %v354_v7 = vpack.c.bf16 %v322_v60, %v306_v59 }
  0x3f   : > { %578 = vmatprep.subr.bf16.mxu1 %v335_v45  ;;  %v272_v4 = vld [vmem:[%s2801_s15 + $0x40] sm:$0xff]  ;;  %370 = vperm.xlu1 %2306, %v364_v2   ;;  %v366_v6 = vld [vmem:[%s4585_s2 + $0x10] sm:$0xff]  ;;  %v337_v9 = vpack.c.bf16 %v289_v62, %v273_v61  ;;  %v309_v11 = vld [vmem:[%s2801_s15 + $0x168] sm:$0xff]  ;;  %v339_v13 = vpack.c.bf16 %v291_v1, %v275_v63 }
  0x40   : > { %526 = vmatpush1.bf16.msra.mxu0 %v332_v46  ;;  %v288_v5 = vld [vmem:[%s2801_s15 + $0xc0] sm:$0xff]  ;;  %v274_v8 = vld [vmem:[%s2801_s15 + $0x50] sm:$0xff]  ;;  %380 = vperm.xlu0 %2305, %v366_v6   ;;  %v325_v12 = vld [vmem:[%s2801_s15 + $0x1e8] sm:$0xff] }
  0x41   : > { %579 = vmatpush1.bf16.msra.mxu1 %v334_v50  ;;  %629 = vmatprep.subr.bf16.mxu0 %v353_v54  ;;  %v290_v10 = vld [vmem:[%s2801_s15 + $0xd0] sm:$0xff]  ;;  %v311_v14 = vld [vmem:[%s2801_s15 + $0x178] sm:$0xff]  ;;  %v336_v16 = vpack.c.bf16 %v288_v5, %v272_v4  ;;  %v365_v17 = vld [vmem:[%s4585_s2 + $0x8] sm:$0xff]  ;;  %v357_v19 = vpack.c.bf16 %v325_v12, %v309_v11 }
  0x42   : > { %682 = vmatprep.subr.bf16.mxu1 %v355_v55  ;;  %v327_v15 = vld [vmem:[%s2801_s15 + $0x1f8] sm:$0xff]  ;;  %v338_v18 = vpack.c.bf16 %v290_v10, %v274_v8  ;;  %v1696_v22 = vld [vmem:[%s4587_s4 + $0x8] sm:$0xff]  ;;  %v1695_v23 = vld [vmem:[%s4587_s4] sm:$0xff] }
  0x43   : > { %2207 = vmatmul.mubr.msk.bf16.gmra.mxu0 %vm398_vm0, %v2861_v56  ;;  %v367_v20 = vld [vmem:[%s4585_s2 + $0x18] sm:$0xff]  ;;  %v359_v21 = vpack.c.bf16 %v327_v15, %v311_v14  ;;  %375 = vperm.xlu1 %2306, %v365_v17   ;;  %v308_v24 = vld [vmem:[%s2801_s15 + $0x160] sm:$0xff]  ;;  %v310_v27 = vld [vmem:[%s2801_s15 + $0x170] sm:$0xff] }
  0x44   : > { %2209 = vmatmul.mubr.msk.bf16.gmra.mxu1 %vm398_vm0, %v2861_v56  ;;  %543 = vmatprep.mubr.bf16.mxu0 %v4589_v0  ;;  %v324_v26 = vld [vmem:[%s2801_s15 + $0x1e0] sm:$0xff]  ;;  %v326_v28 = vld [vmem:[%s2801_s15 + $0x1f0] sm:$0xff]  ;;  %v277_v29 = vld [vmem:[%s2801_s15 + $0x68] sm:$0xff] }
  0x45   : > { %596 = vmatprep.mubr.bf16.mxu1 %v4589_v0  ;;  %385 = vperm.xlu0 %2305, %v367_v20   ;;  %v293_v30 = vld [vmem:[%s2801_s15 + $0xe8] sm:$0xff]  ;;  %v356_v31 = vpack.c.bf16 %v324_v26, %v308_v24  ;;  %v279_v32 = vld [vmem:[%s2801_s15 + $0x78] sm:$0xff]  ;;  %v358_v34 = vpack.c.bf16 %v326_v28, %v310_v27  ;;  %v276_v35 = vld [vmem:[%s2801_s15 + $0x60] sm:$0xff] }
  0x46   : > { %v295_v33 = vld [vmem:[%s2801_s15 + $0xf8] sm:$0xff]  ;;  %v292_v36 = vld [vmem:[%s2801_s15 + $0xe0] sm:$0xff]  ;;  %v341_v37 = vpack.c.bf16 %v293_v30, %v277_v29  ;;  %v278_v38 = vld [vmem:[%s2801_s15 + $0x70] sm:$0xff] }
  0x47   : > { %1704 = vperm.xlu1 %2306, %v1696_v22   ;;  %v294_v39 = vld [vmem:[%s2801_s15 + $0xf0] sm:$0xff]  ;;  %v343_v40 = vpack.c.bf16 %v295_v33, %v279_v32  ;;  %v340_v41 = vpack.c.bf16 %v292_v36, %v276_v35 }
  0x48   : > { %v342_v42 = vpack.c.bf16 %v294_v39, %v278_v38 }
  0x49   : > { %1699 = vperm.xlu0 %2305, %v1695_v23  }
  0x4b   : > { %2210 = vmatmul.mubr.msk.bf16.vlgmr.msra.gmra.mxu0 %vm398_vm0, %v2830_v25 }
  0x4c   : > { %2212 = vmatmul.mubr.msk.bf16.vlgmr.msra.gmra.mxu1 %vm398_vm0, %v2830_v25  ;;  %630 = vmatpush1.bf16.msra.mxu0 %v352_v3 }
  0x4d   : > { %683 = vmatpush1.bf16.msra.mxu1 %v354_v7  ;;  %553 = vmatprep.mubr.bf16.mxu0 %v4589_v0 }
  0x4e   : > { %606 = vmatprep.mubr.bf16.mxu1 %v4589_v0  ;;  %631 = vmatprep.subr.bf16.mxu0 %v337_v9 }
  0x4f   : > { %684 = vmatprep.subr.bf16.mxu1 %v339_v13 }
  0x50   : > { %632 = vmatpush1.bf16.msra.mxu0 %v336_v16 }
  0x51   : > { %685 = vmatpush1.bf16.msra.mxu1 %v338_v18  ;;  %735 = vmatprep.subr.bf16.mxu0 %v357_v19 }
  0x52   : > { %788 = vmatprep.subr.bf16.mxu1 %v359_v21 }
  0x53   : > { %2211 = vmatmul.mubr.msk.bf16.gmra.mxu0 %vm398_vm0, %v2861_v56 }
  0x54   : > { %2213 = vmatmul.mubr.msk.bf16.gmra.mxu1 %vm398_vm0, %v2861_v56  ;;  %649 = vmatprep.mubr.bf16.mxu0 %v4589_v0 }
  0x55   : > { %702 = vmatprep.mubr.bf16.mxu1 %v4589_v0 }
  0x5b   : > { %2214 = vmatmul.mubr.msk.bf16.vlgmr.msra.gmra.mxu0 %vm398_vm0, %v2830_v25 }
  0x5c   : > { %2216 = vmatmul.mubr.msk.bf16.vlgmr.msra.gmra.mxu1 %vm398_vm0, %v2830_v25  ;;  %736 = vmatpush1.bf16.msra.mxu0 %v356_v31 }
  0x5d   : > { %789 = vmatpush1.bf16.msra.mxu1 %v358_v34  ;;  %659 = vmatprep.mubr.bf16.mxu0 %v4589_v0 }
  0x5e   : > { %712 = vmatprep.mubr.bf16.mxu1 %v4589_v0  ;;  %737 = vmatprep.subr.bf16.mxu0 %v341_v37 }
  0x5f   : > { %790 = vmatprep.subr.bf16.mxu1 %v343_v40 }
  0x60   : > { %738 = vmatpush1.bf16.msra.mxu0 %v340_v41 }
  0x61   : > { %791 = vmatpush1.bf16.msra.mxu1 %v342_v42 }
  0x63   : > { %2215 = vmatmul.mubr.msk.bf16.gmra.mxu0 %vm398_vm0, %v2861_v56 }
  0x64   : > { %2217 = vmatmul.mubr.msk.bf16.gmra.mxu1 %vm398_vm0, %v2861_v56  ;;  %755 = vmatprep.mubr.bf16.mxu0 %v4589_v0 }
  0x65   : > { %808 = vmatprep.mubr.bf16.mxu1 %v4589_v0 }
  0x6b   : > { %2218 = vmatmul.mubr.msk.bf16.vlgmr.msra.gmra.mxu0 %vm398_vm0, %v2830_v25 }
  0x6c   : > { %2220 = vmatmul.mubr.msk.bf16.vlgmr.msra.gmra.mxu1 %vm398_vm0, %v2830_v25  ;;  %765 = vmatprep.mubr.bf16.mxu0 %v4589_v0 }
  0x6d   : > { %818 = vmatprep.mubr.bf16.mxu1 %v4589_v0 }
  0x73   : > { %2219 = vmatmul.mubr.msk.bf16.gmra.mxu0 %vm398_vm0, %v2861_v56 }
  0x74   : > { %2221 = vmatmul.mubr.msk.bf16.gmra.mxu1 %vm398_vm0, %v2861_v56  ;;  %1747 = vmatprep.mubr.bf16.mxu0 %v4589_v0 }
  0x75   : > { %1790 = vmatprep.mubr.bf16.mxu1 %v4589_v0 }
  0xba   : > { %v2951_v48 = vpop.permute.xlu1 %370 }
  0xbb   : > { %v2953_v52 = vpop.permute.xlu0 %380 }
  0xbe   : > { %v2955_v53 = vpop.permute.xlu1 %375 }
  0xc0   : > { %v2973_v62 = vpop.permute.xlu0 %385 }
  0xfb   : > { %v439_v43 = vpop.f32.mrf.mxu0 }
  0xfc   : > { %v492_v44 = vpop.f32.mrf.mxu1  ;;  %v2958_v54 = vadd.f32 %v439_v43, %v2951_v48 }
  0xfd   : > { %v441_v45 = vpop.f32.mrf.mxu0  ;;  %v2961_v56 = vadd.f32 %v492_v44, %v2951_v48 }
  0xfe   : > { %v494_v46 = vpop.f32.mrf.mxu1  ;;  %v893_v60 = vmul.f32 1.442695, %v2958_v54  ;;  %v2991_v12 = vadd.f32 %v441_v45, %v2951_v48  ;;  %vm829_vm6 = vcmp.gt.f32.partialorder %v2958_v54, 20.0 }
  0xff   : > { %v443_v47 = vpop.f32.mrf.mxu0  ;;  %v897_v1 = vmul.f32 1.442695, %v2961_v56  ;;  %v2994_v14 = vadd.f32 %v494_v46, %v2951_v48  ;;  %vm831_vm9 = vcmp.gt.f32.partialorder %v2961_v56, 20.0 }
 0x100   : > { %v496_v49 = vpop.f32.mrf.mxu1  ;;  %v2964_v58 = vadd.f32 %v443_v47, %v2955_v53  ;;  %2310 = vpow2.f32 %v893_v60  ;;  %4693 = vst [vmem:[#allocation8_spill] sm:$0xff] %v2991_v12  ;;  %v895_v19 = vmul.f32 1.442695, %v2991_v12 }
 0x101   : > { %v445_v25 = vpop.f32.mrf.mxu0  ;;  %v2967_v59 = vadd.f32 %v496_v49, %v2955_v53  ;;  %2312 = vpow2.f32 %v897_v1  ;;  %4694 = vst [vmem:[#allocation9_spill] sm:$0xff] %v2994_v14  ;;  %v899_v22 = vmul.f32 1.442695, %v2994_v14 }
 0x102   : > { %v498_v51 = vpop.f32.mrf.mxu1  ;;  %v925_v3 = vmul.f32 1.442695, %v2964_v58  ;;  %v2997_v15 = vadd.f32 %v445_v25, %v2955_v53  ;;  %vm845_vm5 = vcmp.gt.f32.partialorder %v2964_v58, 20.0 }
 0x103   : > { %v449_v50 = vpop.f32.mrf.mxu0  ;;  %v929_v5 = vmul.f32 1.442695, %v2967_v59  ;;  %v3000_v17 = vadd.f32 %v498_v51, %v2955_v53  ;;  %vm847_vm7 = vcmp.gt.f32.partialorder %v2967_v59, 20.0 }
 0x104   : > { %v502_v57 = vpop.f32.mrf.mxu1  ;;  %v2971_v61 = vadd.f32 %v449_v50, %v2953_v52  ;;  %2314 = vpow2.f32 %v925_v3  ;;  %4695 = vst [vmem:[#allocation10_spill] sm:$0xff] %v2997_v15  ;;  %v927_v24 = vmul.f32 1.442695, %v2997_v15 }
 0x105   : > { %v451_v55 = vpop.f32.mrf.mxu0  ;;  %v2978_v4 = vadd.f32 %v502_v57, %v2953_v52  ;;  %2316 = vpow2.f32 %v929_v5  ;;  %4696 = vst [vmem:[#allocation11_spill] sm:$0xff] %v3000_v17  ;;  %v931_v28 = vmul.f32 1.442695, %v3000_v17 }
 0x106   : > { %v504_v2 = vpop.f32.mrf.mxu1  ;;  %v957_v7 = vmul.f32 1.442695, %v2971_v61  ;;  %v3005_v20 = vadd.f32 %v451_v55, %v2953_v52  ;;  %vm861_vm12 = vcmp.gt.f32.partialorder %v2971_v61, 20.0 }
 0x107   : > { %v453_v63 = vpop.f32.mrf.mxu0  ;;  %v961_v9 = vmul.f32 1.442695, %v2978_v4  ;;  %v3009_v23 = vadd.f32 %v504_v2, %v2953_v52  ;;  %vm863_vm14 = vcmp.gt.f32.partialorder %v2978_v4, 20.0 }
 0x108   : > { %v2982_v6 = vadd.f32 %v453_v63, %v2973_v62  ;;  %v506_v8 = vpop.f32.mrf.mxu1  ;;  %2318 = vpow2.f32 %v957_v7  ;;  %4697 = vst [vmem:[#allocation12_spill] sm:$0xff] %v3005_v20  ;;  %v959_v30 = vmul.f32 1.442695, %v3005_v20 }
 0x109   : > { %v2988_v11 = vadd.f32 %v506_v8, %v2973_v62  ;;  %v455_v13 = vpop.f32.mrf.mxu0  ;;  %2320 = vpow2.f32 %v961_v9  ;;  %4698 = vst [vmem:[#allocation13_spill] sm:$0xff] %v3009_v23  ;;  %v963_v33 = vmul.f32 1.442695, %v3009_v23 }
 0x10a   : > { %v989_v10 = vmul.f32 1.442695, %v2982_v6  ;;  %v508_v16 = vpop.f32.mrf.mxu1  ;;  %v3013_v26 = vadd.f32 %v455_v13, %v2973_v62  ;;  %vm877_vm15 = vcmp.gt.f32.partialorder %v2982_v6, 20.0 }
 0x10b   : > { %v993_v18 = vmul.f32 1.442695, %v2988_v11  ;;  %v545_v21 = vpop.f32.mrf.mxu0  ;;  %v3060_v1 = vadd.f32 %v508_v16, %v2973_v62 }
 0x10c   : > { %2322 = vpow2.f32 %v989_v10  ;;  %4699 = vst [vmem:[#allocation14_spill] sm:$0xff] %v3013_v26  ;;  %v598_v27 = vpop.f32.mrf.mxu1  ;;  %v991_v35 = vmul.f32 1.442695, %v3013_v26  ;;  %v3036_v41 = vadd.f32 %v545_v21, %v2951_v48 }
 0x10d   : > { %2324 = vpow2.f32 %v993_v18  ;;  %v3016_v29 = vpop.eup %2310  ;;  %v3019_v31 = vpop.f32.mrf.mxu0  ;;  %v3050_v51 = vadd.f32 %v598_v27, %v2951_v48  ;;  %4700 = vst [vmem:[#allocation15_spill] sm:$0xff] %v3060_v1 }
 0x10e   : > { %2326 = vpow2.f32 %v895_v19  ;;  %v3021_v32 = vpop.eup %2312  ;;  %v3027_v36 = vpop.f32.mrf.mxu1  ;;  %v1021_v38 = vadd.f32 1.0, %v3016_v29  ;;  %v901_v50 = vmul.f32 1.442695, %v3036_v41  ;;  %v1024_v3 = vmul.f32 -0.5, %v3016_v29 }
 0x10f   : > { %2328 = vpow2.f32 %v899_v22  ;;  %v1039_v40 = vadd.f32 1.0, %v3021_v32  ;;  %v549_v42 = vpop.f32.mrf.mxu0  ;;  %v905_v8 = vmul.f32 1.442695, %v3050_v51  ;;  %v1042_v13 = vmul.f32 -0.5, %v3021_v32 }
 0x110   : > { %2330 = vpow2.f32 %v927_v24  ;;  %v602_v46 = vpop.f32.mrf.mxu1  ;;  %v3046_v49 = vadd.f32 %v549_v42, %v2955_v53  ;;  %v995_v22 = vmul.f32 1.442695, %v3060_v1 }
 0x111   : > { %v3024_v34 = vpop.eup %2314  ;;  %2332 = vpow2.f32 %v931_v28  ;;  %v3052_v55 = vpop.f32.mrf.mxu0  ;;  %v3056_v60 = vadd.f32 %v602_v46, %v2955_v53  ;;  %v1025_v28 = vadd.f32 1.0, %v1024_v3 }
 0x112   : > { %v3029_v37 = vpop.eup %2316  ;;  %2334 = vpow2.f32 %v959_v30  ;;  %v1165_v43 = vadd.f32 1.0, %v3024_v34  ;;  %v3062_v2 = vpop.f32.mrf.mxu1  ;;  %v933_v5 = vmul.f32 1.442695, %v3046_v49  ;;  %v1168_v16 = vmul.f32 -0.5, %v3024_v34 }
 0x113   : > { %2336 = vpow2.f32 %v963_v33  ;;  %v1183_v45 = vadd.f32 1.0, %v3029_v37  ;;  %v555_v9 = vpop.f32.mrf.mxu0  ;;  %v937_v18 = vmul.f32 1.442695, %v3056_v60  ;;  %v1186_v21 = vmul.f32 -0.5, %v3029_v37 }
 0x114   : > { %2338 = vpow2.f32 %v991_v35  ;;  %v608_v24 = vpop.f32.mrf.mxu1  ;;  %v1027_v35 = vand.u32 2147483647, %v3016_v29  ;;  %v1169_v46 = vadd.f32 1.0, %v1168_v16  ;;  %v3220_v15 = vadd.f32 %v3062_v2, %v2955_v53 }
 0x115   : > { %v3032_v39 = vpop.eup %2318  ;;  %2340 = vlog2.f32 %v1021_v38  ;;  %v1045_v38 = vand.u32 2147483647, %v3021_v32  ;;  %v3088_v42 = vpop.f32.mrf.mxu0  ;;  %v3113_v17 = vadd.f32 %v608_v24, %v2953_v52  ;;  %v3131_v24 = vadd.f32 %v3019_v31, %v2951_v48 }
 0x116   : > { %v3039_v44 = vpop.eup %2320  ;;  %v1309_v25 = vadd.f32 1.0, %v3032_v39  ;;  %2342 = vlog2.f32 %v1039_v40  ;;  %v3086_v40 = vadd.f32 %v555_v9, %v2953_v52  ;;  %v3096_v3 = vpop.f32.mrf.mxu1  ;;  %v1312_v9 = vmul.f32 -0.5, %v3032_v39  ;;  %4728 = vst [vmem:[#allocation27_spill] sm:$0xff] %v3220_v15 }
 0x117   : > { %2344 = vlog2.f32 %v1165_v43  ;;  %v1327_v57 = vadd.f32 1.0, %v3039_v44  ;;  %vm3105_vm1 = vcmp.lt.f32.partialorder %v1027_v35, 0.0004427343  ;;  %4710 = vst [vmem:[#allocation23_spill] sm:$0xff] %v3113_v17  ;;  %vm3118_vm2 = vcmp.lt.f32.partialorder %v1045_v38, 0.0004427343 }
 0x118   : > { %2346 = vlog2.f32 %v1183_v45  ;;  %v1043_v45 = vadd.f32 1.0, %v1042_v13  ;;  %v1330_v13 = vmul.f32 -0.5, %v3039_v44  ;;  %v965_v0 = vmul.f32 1.442695, %v3086_v40  ;;  %4715 = vst [vmem:[#allocation24_spill] sm:$0xff] %v3131_v24 }
 0x119   : > { %v3042_v47 = vpop.eup %2322  ;;  %2348 = vlog2.f32 %v1309_v25  ;;  %v1171_v25 = vand.u32 2147483647, %v3024_v34  ;;  %v3123_v35 = vmul.f32 %v3024_v34, %v1169_v46  ;;  %v1315_v38 = vand.u32 2147483647, %v3032_v39  ;;  %v612_v46 = vpop.f32.mrf.mxu1 }
 0x11a   : > { %v1453_v63 = vadd.f32 1.0, %v3042_v47  ;;  %v3066_v7 = vpop.eup %2324  ;;  %2350 = vpow2.f32 %v901_v50  ;;  %v3116_v14 = vmul.f32 %v3021_v32, %v1043_v45  ;;  %v1333_v34 = vand.u32 2147483647, %v3039_v44 }
 0x11b   : > { %v3069_v10 = vpop.eup %2326  ;;  %2352 = vlog2.f32 %v1327_v57  ;;  %v1471_v30 = vadd.f32 1.0, %v3066_v7  ;;  %v1187_v57 = vadd.f32 1.0, %v1186_v21  ;;  %v1456_v21 = vmul.f32 -0.5, %v3042_v47 }
 0x11c   : > { %4701 = vst [vmem:[#allocation16_spill] sm:$0xff] %v3069_v10  ;;  %v3074_v19 = vpop.eup %2328  ;;  %2354 = vlog2.f32 %v1453_v63  ;;  %v1189_v63 = vand.u32 2147483647, %v3029_v37  ;;  %vm3125_vm3 = vcmp.lt.f32.partialorder %v1171_v25, 0.0004427343  ;;  %v3144_v45 = vadd.f32 %v3027_v36, %v2951_v48 }
 0x11d   : > { %4702 = vst [vmem:[#allocation17_spill] sm:$0xff] %v3074_v19  ;;  %v3078_v27 = vpop.eup %2330  ;;  %2356 = vpow2.f32 %v933_v5  ;;  %v1313_v31 = vadd.f32 1.0, %v1312_v9  ;;  %v1331_v19 = vadd.f32 1.0, %v1330_v13  ;;  %v969_v23 = vmul.f32 1.442695, %v3113_v17 }
 0x11e   : > { %4703 = vst [vmem:[#allocation18_spill] sm:$0xff] %v3078_v27  ;;  %v3081_v33 = vpop.eup %2332  ;;  %2358 = vpow2.f32 %v905_v8  ;;  %v3101_v8 = vmul.f32 %v3016_v29, %v1025_v28  ;;  %v559_v29 = vpop.f32.mrf.mxu0  ;;  %vm3136_vm4 = vcmp.lt.f32.partialorder %v1189_v63, 0.0004427343  ;;  %4718 = vst [vmem:[#allocation25_spill] sm:$0xff] %v3144_v45  ;;  %v1457_v27 = vadd.f32 1.0, %v1456_v21 }
 0x11f   : > { %4704 = vst [vmem:[#allocation19_spill] sm:$0xff] %v3081_v33  ;;  %v3090_v43 = vpop.eup %2334  ;;  %2360 = vpow2.f32 %v937_v18  ;;  %v3134_v33 = vmul.f32 %v3029_v37, %v1187_v57  ;;  %v1459_v37 = vand.u32 2147483647, %v3042_v47  ;;  %v3150_v57 = vadd.f32 %v3052_v55, %v2955_v53 }
 0x120   : > { %4705 = vst [vmem:[#allocation20_spill] sm:$0xff] %v3090_v43  ;;  %v3093_v50 = vpop.eup %2336  ;;  %2362 = vpow2.f32 %v995_v22  ;;  %v1474_v22 = vmul.f32 -0.5, %v3066_v7  ;;  %v3153_v36 = vpop.f32.mrf.mxu0  ;;  %v903_v26 = vmul.f32 1.442695, %v3131_v24  ;;  %v3161_v55 = vadd.f32 %v559_v29, %v2973_v62 }
 0x121   : > { %4706 = vst [vmem:[#allocation21_spill] sm:$0xff] %v3093_v50  ;;  %v3098_v5 = vpop.eup %2338  ;;  %2364 = vlog2.f32 %v1471_v30  ;;  %4719 = vst [vmem:[#allocation26_spill] sm:$0xff] %v3150_v57  ;;  %vm3163_vm8 = vcmp.lt.f32.partialorder %v1315_v38, 0.0004427343  ;;  %v1477_v20 = vand.u32 2147483647, %v3066_v7  ;;  %v3176_v24 = vmul.f32 %v3032_v39, %v1313_v31 }
 0x122   : > { %4707 = vst [vmem:[#allocation22_spill] sm:$0xff] %v3098_v5  ;;  %v2341_v16 = vpop.eup %2340  ;;  %v1475_v1 = vadd.f32 1.0, %v1474_v22  ;;  %2366 = vpow2.f32 %v965_v0  ;;  %v907_v50 = vmul.f32 1.442695, %v3144_v45  ;;  %vm3181_vm10 = vcmp.lt.f32.partialorder %v1333_v34, 0.0004427343 }
 0x123   : > { %v2343_v28 = vpop.eup %2342  ;;  %v1023_v9 = vmul.f32 0.6931472, %v2341_v16  ;;  %v3170_v16 = vadd.f32 %v612_v46, %v2973_v62  ;;  %v935_v45 = vmul.f32 1.442695, %v3150_v57  ;;  %v3189_v43 = vmul.f32 %v3042_v47, %v1457_v27 }
 0x124   : > { %v2345_v12 = vpop.eup %2344  ;;  %v1041_v22 = vmul.f32 0.6931472, %v2343_v28  ;;  %v3179_v28 = vmul.f32 %v3039_v44, %v1331_v19  ;;  %vm3191_vm11 = vcmp.lt.f32.partialorder %v1459_v37, 0.0004427343  ;;  %v3196_v39 = vmul.f32 %v3066_v7, %v1475_v1  ;;  %v651_v19 = vpop.f32.mrf.mxu0 }
 0x125   : > { %v2347_v25 = vpop.eup %2346  ;;  %v1167_v13 = vmul.f32 0.6931472, %v2345_v12  ;;  %v3172_v12 = vpop.f32.mrf.mxu1  ;;  %2368 = vpow2.f32 %v969_v23  ;;  %v997_v1 = vmul.f32 1.442695, %v3161_v55  ;;  %vm3214_vm13 = vcmp.lt.f32.partialorder %v1477_v20, 0.0004427343 }
 0x126   : > { %v2349_v63 = vpop.eup %2348  ;;  %v1185_v29 = vmul.f32 0.6931472, %v2347_v25  ;;  %v1029_v25 = vsel %vm3105_vm1, %v3101_v8, %v1023_v9  ;;  %2370 = vpow2.f32 %v903_v26  ;;  %v1047_v23 = vsel %vm3118_vm2, %v3116_v14, %v1041_v22  ;;  %v3237_v32 = vpop.f32.mrf.mxu0 }
 0x127   : > { %v3155_v10 = vpop.eup %2350  ;;  %v1173_v47 = vsel %vm3125_vm3, %v3123_v35, %v1167_v13  ;;  %2372 = vpow2.f32 %v907_v50  ;;  %v1001_v8 = vmul.f32 1.442695, %v3170_v16  ;;  %v704_v26 = vpop.f32.mrf.mxu1  ;;  %v1311_v30 = vmul.f32 0.6931472, %v2349_v63 }
 0x128   : > { %v2353_v21 = vpop.eup %2352  ;;  %v1057_v44 = vadd.f32 1.0, %v3155_v10  ;;  %v1191_v35 = vsel %vm3136_vm4, %v3134_v33, %v1185_v29  ;;  %2374 = vpow2.f32 %v935_v45  ;;  %v3234_v2 = vsel %vm845_vm5, %v2964_v58, %v1173_v47 }
 0x129   : > { %v2355_v5 = vpop.eup %2354  ;;  %v1329_v50 = vmul.f32 0.6931472, %v2353_v21  ;;  %vm879_vm1 = vcmp.gt.f32.partialorder %v2988_v11, 20.0  ;;  %v3242_v45 = vadd.f32 %v651_v19, %v2951_v48  ;;  %v3247_v58 = vsel %vm829_vm6, %v2958_v54, %v1029_v25  ;;  %v3257_v9 = vpop.f32.mrf.mxu1 }
 0x12a   : > { %v3186_v46 = vpop.eup %2356  ;;  %2376 = vlog2.f32 %v1057_v44  ;;  %v1455_v33 = vmul.f32 0.6931472, %v2355_v5  ;;  %v3252_v63 = vsel %vm847_vm7, %v2967_v59, %v1191_v35  ;;  %v3255_v5 = vadd.f32 %v704_v26, %v2951_v48  ;;  %v655_v44 = vpop.f32.mrf.mxu0 }
 0x12b   : > { %v3199_v34 = vpop.eup %2358  ;;  %v1201_v14 = vadd.f32 1.0, %v3186_v46  ;;  %2378 = vpow2.f32 %v997_v1  ;;  %v1317_v13 = vsel %vm3163_vm8, %v3176_v24, %v1311_v30  ;;  %v939_v54 = vmul.f32 1.442695, %v3220_v15 }
 0x12c   : > { %v3209_v7 = vpop.eup %2360  ;;  %v1075_v31 = vadd.f32 1.0, %v3199_v34  ;;  %2380 = vpow2.f32 %v1001_v8  ;;  %v3266_v22 = vsel %vm831_vm9, %v2961_v56, %v1047_v23  ;;  %v1335_v29 = vsel %vm3181_vm10, %v3179_v28, %v1329_v50  ;;  %v3314_v27 = vpop.f32.mrf.mxu0 }
 0x12d   : > { %v3223_v18 = vpop.eup %2362  ;;  %v1219_v37 = vadd.f32 1.0, %v3209_v7  ;;  %2382 = vlog2.f32 %v1201_v14  ;;  %v1461_v24 = vsel %vm3191_vm11, %v3189_v43, %v1455_v33  ;;  %v1060_v19 = vmul.f32 -0.5, %v3155_v10  ;;  %v708_v43 = vpop.f32.mrf.mxu1 }
 0x12e   : > { %v2365_v20 = vpop.eup %2364  ;;  %2384 = vlog2.f32 %v1075_v31  ;;  %v909_v56 = vmul.f32 1.442695, %v3242_v45  ;;  %v3285_v28 = vsel %vm861_vm12, %v2971_v61, %v1317_v13  ;;  %v3289_v38 = vadd.f32 %v3088_v42, %v2953_v52 }
 0x12f   : > { %v1473_v21 = vmul.f32 0.6931472, %v2365_v20  ;;  %v3273_v0 = vpop.eup %2366  ;;  %2386 = vlog2.f32 %v1219_v37  ;;  %v913_v17 = vmul.f32 1.442695, %v3255_v5  ;;  %v1078_v1 = vmul.f32 -0.5, %v3199_v34 }
 0x130   : > { %4729 = vst [vmem:[#allocation28_spill] sm:$0xff] %v3289_v38  ;;  %2388 = vpow2.f32 %v939_v54  ;;  %v3297_v23 = vadd.f32 %v655_v44, %v2955_v53  ;;  %v3302_v61 = vsel %vm863_vm14, %v2978_v4, %v1335_v29  ;;  %v3307_v42 = vsel %vm877_vm15, %v2982_v6, %v1461_v24  ;;  %v661_v44 = vpop.f32.mrf.mxu0 }
 0x131   : > { %v1479_v47 = vsel %vm3214_vm13, %v3196_v39, %v1473_v21  ;;  %v1345_v8 = vadd.f32 1.0, %v3273_v0  ;;  %v3312_v39 = vadd.f32 %v3096_v3, %v2953_v52  ;;  %v1061_v35 = vadd.f32 1.0, %v1060_v19 }
 0x132   : > { %v3316_v26 = vpop.eup %2368  ;;  %v1063_v30 = vand.u32 2147483647, %v3155_v10  ;;  %2390 = vpow2.f32 %v909_v56  ;;  %v3320_v4 = vadd.f32 %v708_v43, %v2955_v53  ;;  %v3327_v6 = vsel %vm879_vm1, %v2988_v11, %v1479_v47 }
 0x133   : > { %4730 = vst [vmem:[#allocation29_spill] sm:$0xff] %v3312_v39  ;;  %v3322_v14 = vpop.eup %2370  ;;  %v1204_v3 = vmul.f32 -0.5, %v3186_v46  ;;  %v967_v20 = vmul.f32 1.442695, %v3289_v38  ;;  %2392 = vpow2.f32 %v913_v17  ;;  %v1079_v33 = vadd.f32 1.0, %v1078_v1 }
 0x134   : > { %4731 = vst [vmem:[#allocation30_spill] sm:$0xff] %v3322_v14  ;;  %v3331_v50 = vpop.eup %2372  ;;  %v1081_v37 = vand.u32 2147483647, %v3199_v34  ;;  %v941_v13 = vmul.f32 1.442695, %v3297_v23  ;;  %2394 = vlog2.f32 %v1345_v8  ;;  %v1363_v54 = vadd.f32 1.0, %v3316_v26 }
 0x135   : > { %4732 = vst [vmem:[#allocation31_spill] sm:$0xff] %v3331_v50  ;;  %v3337_v21 = vpop.eup %2374  ;;  %v1207_v11 = vand.u32 2147483647, %v3186_v46  ;;  %v3343_v29 = vadd.f32 %v3153_v36, %v2973_v62  ;;  %v3348_v56 = vmul.f32 %v3155_v10, %v1061_v35  ;;  %v1222_v17 = vmul.f32 -0.5, %v3209_v7 }
 0x136   : > { %4733 = vst [vmem:[#allocation32_spill] sm:$0xff] %v3337_v21  ;;  %v945_v43 = vmul.f32 1.442695, %v3320_v4  ;;  %v1205_v1 = vadd.f32 1.0, %v1204_v3  ;;  %v1348_v8 = vmul.f32 -0.5, %v3273_v0  ;;  %2396 = vpow2.f32 %v967_v20  ;;  %v3369_v3 = vpop.f32.mrf.mxu1 }
 0x137   : > { %4734 = vst [vmem:[#allocation33_spill] sm:$0xff] %v3343_v29  ;;  %v2377_v24 = vpop.eup %2376  ;;  %v971_v36 = vmul.f32 1.442695, %v3312_v39  ;;  %vm3358_vm2 = vcmp.lt.f32.partialorder %v1063_v30, 0.0004427343  ;;  %v3363_v10 = vmul.f32 %v3199_v34, %v1079_v33  ;;  %2398 = vpow2.f32 %v941_v13 }
 0x138   : > { %v3352_v47 = vpop.eup %2378  ;;  %vm3365_vm3 = vcmp.lt.f32.partialorder %v1081_v37, 0.0004427343  ;;  %v3372_v20 = vadd.f32 %v661_v44, %v2953_v52  ;;  %vm3374_vm4 = vcmp.lt.f32.partialorder %v1207_v11, 0.0004427343  ;;  %v1225_v30 = vand.u32 2147483647, %v3209_v7  ;;  %v714_v39 = vpop.f32.mrf.mxu1 }
 0x139   : > { %v3356_v25 = vpop.eup %2380  ;;  %2400 = vlog2.f32 %v1363_v54  ;;  %v999_v34 = vmul.f32 1.442695, %v3343_v29  ;;  %vm849_vm5 = vcmp.gt.f32.partialorder %v3046_v49, 20.0  ;;  %v1223_v37 = vadd.f32 1.0, %v1222_v17 }
 0x13a   : > { %v2383_v19 = vpop.eup %2382  ;;  %v1489_v13 = vadd.f32 1.0, %v3352_v47  ;;  %v3384_v44 = vadd.f32 %v3172_v12, %v2973_v62  ;;  %2402 = vpow2.f32 %v945_v43  ;;  %vm833_vm6 = vcmp.gt.f32.partialorder %v3036_v41, 20.0 }
 0x13b   : > { %v2385_v33 = vpop.eup %2384  ;;  %vm835_vm7 = vcmp.gt.f32.partialorder %v3050_v51, 20.0  ;;  %v1206_v54 = vmul.f32 %v3186_v46, %v1205_v1  ;;  %v1349_v15 = vadd.f32 1.0, %v1348_v8  ;;  %2404 = vpow2.f32 %v971_v36 }
 0x13c   : > { %v2387_v11 = vpop.eup %2386  ;;  %v1507_v57 = vadd.f32 1.0, %v3356_v25  ;;  %v1203_v50 = vmul.f32 0.6931472, %v2383_v19  ;;  %vm851_vm8 = vcmp.gt.f32.partialorder %v3056_v60, 20.0  ;;  %v1351_v17 = vand.u32 2147483647, %v3273_v0 }
 0x13d   : > { %v3394_v12 = vadd.f32 %v3237_v32, %v2951_v48  ;;  %v973_v43 = vmul.f32 1.442695, %v3372_v20  ;;  %v3397_v21 = vpop.eup %2388  ;;  %v1059_v29 = vmul.f32 0.6931472, %v2377_v24  ;;  %v1077_v46 = vmul.f32 0.6931472, %v2385_v33  ;;  %v3405_v32 = vpop.f32.mrf.mxu0 }
 0x13e   : > { %4742 = vst [vmem:[#allocation35_spill] sm:$0xff] %v3397_v21  ;;  %2406 = vpow2.f32 %v999_v34  ;;  %v3401_v1 = vadd.f32 %v3257_v9, %v2951_v48  ;;  %v1221_v19 = vmul.f32 0.6931472, %v2387_v11  ;;  %v1366_v8 = vmul.f32 -0.5, %v3316_v26 }
 0x13f   : > { %4741 = vst [vmem:[#allocation34_spill] sm:$0xff] %v3394_v12  ;;  %2408 = vlog2.f32 %v1489_v13  ;;  %v1003_v36 = vmul.f32 1.442695, %v3384_v44  ;;  %v3407_v38 = vpop.eup %2390  ;;  %v1224_v14 = vmul.f32 %v3209_v7, %v1223_v37  ;;  %vm3410_vm9 = vcmp.lt.f32.partialorder %v1225_v30, 0.0004427343  ;;  %v3429_v30 = vpop.f32.mrf.mxu1 }
 0x140   : > { %4743 = vst [vmem:[#allocation36_spill] sm:$0xff] %v3401_v1  ;;  %v3415_v34 = vmul.f32 %v3273_v0, %v1349_v15  ;;  %2410 = vlog2.f32 %v1507_v57  ;;  %v3417_v9 = vpop.eup %2392  ;;  %v1209_v33 = vsel %vm3374_vm4, %v1206_v54, %v1203_v50  ;;  %vm3421_vm10 = vcmp.lt.f32.partialorder %v1351_v17, 0.0004427343  ;;  %v665_v17 = vpop.f32.mrf.mxu0 }
 0x141   : > { %v911_v11 = vmul.f32 1.442695, %v3394_v12  ;;  %2412 = vpow2.f32 %v973_v43  ;;  %v3427_v7 = vadd.f32 %v714_v39, %v2953_v52  ;;  %v1065_v57 = vsel %vm3358_vm2, %v3348_v56, %v1059_v29  ;;  %v2395_v31 = vpop.eup %2394 }
 0x142   : > { %v1083_v15 = vsel %vm3365_vm3, %v3363_v10, %v1077_v46  ;;  %v1369_v0 = vand.u32 2147483647, %v3316_v26  ;;  %v915_v50 = vmul.f32 1.442695, %v3401_v1  ;;  %v1227_v37 = vsel %vm3410_vm9, %v1224_v14, %v1221_v19  ;;  %v718_v46 = vpop.f32.mrf.mxu1 }
 0x143   : > { %v1367_v39 = vadd.f32 1.0, %v1366_v8  ;;  %2414 = vpow2.f32 %v1003_v36  ;;  %v1093_v54 = vadd.f32 1.0, %v3407_v38  ;;  %v3445_v59 = vsel %vm849_vm5, %v3046_v49, %v1209_v33  ;;  %v3454_v14 = vpop.eup %2396 }
 0x144   : > { %4748 = vst [vmem:[#allocation37_spill] sm:$0xff] %v3445_v59  ;;  %vm865_vm11 = vcmp.gt.f32.partialorder %v3086_v40, 20.0  ;;  %v1492_v29 = vmul.f32 -0.5, %v3352_v47  ;;  %v1111_v56 = vadd.f32 1.0, %v3417_v9  ;;  %v3452_v10 = vadd.f32 %v3314_v27, %v2955_v53  ;;  %v3467_v19 = vpop.eup %2398  ;;  %v720_v59 = vpop.f32.mrf.mxu1 }
 0x145   : > { %v3459_v35 = vsel %vm833_vm6, %v3036_v41, %v1065_v57  ;;  %v3464_v49 = vsel %vm835_vm7, %v3050_v51, %v1083_v15  ;;  %2416 = vpow2.f32 %v911_v11  ;;  %v977_v43 = vmul.f32 1.442695, %v3427_v7 }
 0x146   : > { %4749 = vst [vmem:[#allocation38_spill] sm:$0xff] %v3452_v10  ;;  %4750 = vst [vmem:[#allocation39_spill] sm:$0xff] %v3459_v35  ;;  %v3472_v27 = vsel %vm851_vm8, %v3056_v60, %v1227_v37  ;;  %v1347_v8 = vmul.f32 0.6931472, %v2395_v31  ;;  %vm3474_vm12 = vcmp.lt.f32.partialorder %v1369_v0, 0.0004427343  ;;  %2418 = vpow2.f32 %v915_v50  ;;  %v2401_v36 = vpop.eup %2400 }
 0x147   : > { %4751 = vst [vmem:[#allocation40_spill] sm:$0xff] %v3464_v49  ;;  %4752 = vst [vmem:[#allocation41_spill] sm:$0xff] %v3472_v27  ;;  %v3479_v51 = vadd.f32 %v665_v17, %v2973_v62  ;;  %v3484_v33 = vmul.f32 %v3316_v26, %v1367_v39  ;;  %v1495_v11 = vand.u32 2147483647, %v3352_v47  ;;  %2420 = vlog2.f32 %v1093_v54  ;;  %v3487_v60 = vpop.eup %2402  ;;  %v4755_v54 = vld [vmem:[#allocation23_spill] sm:$0xff] }
 0x148   : > { %v1493_v57 = vadd.f32 1.0, %v1492_v29  ;;  %2422 = vlog2.f32 %v1111_v56  ;;  %v943_v15 = vmul.f32 1.442695, %v3452_v10  ;;  %v3491_v0 = vadd.f32 %v718_v46, %v2973_v62  ;;  %v3493_v50 = vpop.eup %2404  ;;  %v667_v10 = vpop.f32.mrf.mxu0 }
 0x149   : > { %v1510_v26 = vmul.f32 -0.5, %v3356_v25  ;;  %v1237_v37 = vadd.f32 1.0, %v3467_v19  ;;  %2424 = vpow2.f32 %v977_v43  ;;  %v1353_v39 = vsel %vm3421_vm10, %v3415_v34, %v1347_v8 }
 0x14a   : > { %vm867_vm13 = vcmp.gt.f32.partialorder %v4755_v54, 20.0  ;;  %v1513_v17 = vand.u32 2147483647, %v3356_v25  ;;  %v3506_v29 = vadd.f32 %v3369_v3, %v2955_v53  ;;  %v1005_v56 = vmul.f32 1.442695, %v3479_v51 }
 0x14b   : > { %v3509_v46 = vpop.eup %2406  ;;  %v1365_v31 = vmul.f32 0.6931472, %v2401_v36  ;;  %vm3511_vm14 = vcmp.lt.f32.partialorder %v1495_v11, 0.0004427343  ;;  %v1096_v13 = vmul.f32 -0.5, %v3407_v38  ;;  %v1255_v34 = vadd.f32 1.0, %v3487_v60 }
 0x14c   : > { %4756 = vst [vmem:[#allocation23_spill] sm:$0xff] %v3506_v29  ;;  %v2409_v43 = vpop.eup %2408  ;;  %v1494_v8 = vmul.f32 %v3352_v47, %v1493_v57  ;;  %2426 = vpow2.f32 %v943_v15  ;;  %v3520_v3 = vadd.f32 %v3405_v32, %v2953_v52  ;;  %v1009_v1 = vmul.f32 1.442695, %v3491_v0 }
 0x14d   : > { %v2411_v36 = vpop.eup %2410  ;;  %v3526_v11 = vsel %vm865_vm11, %v3086_v40, %v1353_v39  ;;  %vm881_vm15 = vcmp.gt.f32.partialorder %v3161_v55, 20.0  ;;  %v1511_v12 = vadd.f32 1.0, %v1510_v26  ;;  %v1114_v49 = vmul.f32 -0.5, %v3417_v9 }
 0x14e   : > { %4759 = vst [vmem:[#allocation42_spill] sm:$0xff] %v3520_v3  ;;  %2428 = vlog2.f32 %v1237_v37  ;;  %v3530_v47 = vpop.eup %2412  ;;  %vm883_vm1 = vcmp.gt.f32.partialorder %v3170_v16, 20.0  ;;  %vm3533_vm2 = vcmp.lt.f32.partialorder %v1513_v17, 0.0004427343  ;;  %v1099_v57 = vand.u32 2147483647, %v3407_v38 }
 0x14f   : > { %v947_v15 = vmul.f32 1.442695, %v3506_v29  ;;  %2430 = vpow2.f32 %v1005_v56  ;;  %v1371_v40 = vsel %vm3474_vm12, %v3484_v33, %v1365_v31  ;;  %v1491_v26 = vmul.f32 0.6931472, %v2409_v43  ;;  %v757_v29 = vpop.f32.mrf.mxu0 }
 0x150   : > { %v1097_v39 = vadd.f32 1.0, %v1096_v13  ;;  %2432 = vlog2.f32 %v1255_v34  ;;  %v3542_v37 = vpop.eup %2414  ;;  %v1509_v27 = vmul.f32 0.6931472, %v2411_v36  ;;  %v975_v17 = vmul.f32 1.442695, %v3520_v3 }
 0x151   : > { %v3547_v35 = vadd.f32 %v3429_v30, %v2953_v52  ;;  %2434 = vpow2.f32 %v1009_v1  ;;  %v1512_v56 = vmul.f32 %v3356_v25, %v1511_v12  ;;  %v1115_v21 = vadd.f32 1.0, %v1114_v49 }
 0x152   : > { %v1117_v41 = vand.u32 2147483647, %v3417_v9  ;;  %v1381_v33 = vadd.f32 1.0, %v3530_v47  ;;  %v3552_v31 = vpop.eup %2416  ;;  %vm3554_vm3 = vcmp.lt.f32.partialorder %v1099_v57, 0.0004427343  ;;  %v1240_v34 = vmul.f32 -0.5, %v3467_v19 }
 0x153   : > { %4762 = vst [vmem:[#allocation43_spill] sm:$0xff] %v3547_v35  ;;  %4763 = vst [vmem:[#allocation44_spill] sm:$0xff] %v3552_v31  ;;  %v1258_v30 = vmul.f32 -0.5, %v3487_v60  ;;  %2436 = vpow2.f32 %v947_v15  ;;  %v3560_v1 = vpop.eup %2418  ;;  %v3565_v25 = vsel %vm867_vm13, %v4755_v54, %v1371_v40  ;;  %v1497_v12 = vsel %vm3511_vm14, %v1494_v8, %v1491_v26  ;;  %v810_v54 = vpop.f32.mrf.mxu1  ;;  %v4781_v31 = vld [vmem:[#allocation20_spill] sm:$0xff] }
 0x154   : > { %4766 = vst [vmem:[#allocation45_spill] sm:$0xff] %v3560_v1  ;;  %4767 = vst [vmem:[#allocation46_spill] sm:$0xff] %v3565_v25  ;;  %v1098_v49 = vmul.f32 %v3407_v38, %v1097_v39  ;;  %v3571_v43 = vadd.f32 %v757_v29, %v2951_v48  ;;  %v2421_v36 = vpop.eup %2420  ;;  %v1515_v57 = vsel %vm3533_vm2, %v1512_v56, %v1509_v27  ;;  %2438 = vpow2.f32 %v975_v17  ;;  %v759_v39 = vpop.f32.mrf.mxu0 }
 0x155   : > { %v979_v15 = vmul.f32 1.442695, %v3547_v35  ;;  %v3577_v1 = vadd.f32 %v667_v10, %v2973_v62  ;;  %v2423_v40 = vpop.eup %2422  ;;  %vm837_vm4 = vcmp.gt.f32.partialorder %v3242_v45, 20.0  ;;  %v1116_v24 = vmul.f32 %v3417_v9, %v1115_v21 }
 0x156   : > { %4768 = vst [vmem:[#allocation47_spill] sm:$0xff] %v3571_v43  ;;  %vm3581_vm5 = vcmp.lt.f32.partialorder %v1117_v41, 0.0004427343  ;;  %v1243_v29 = vand.u32 2147483647, %v3467_v19  ;;  %2440 = vlog2.f32 %v1381_v33  ;;  %v3586_v27 = vpop.eup %2424  ;;  %v3591_v10 = vsel %vm881_vm15, %v3161_v55, %v1497_v12  ;;  %v4792_v12 = vld [vmem:[#allocation21_spill] sm:$0xff] }
 0x157   : > { %4769 = vst [vmem:[#allocation48_spill] sm:$0xff] %v3577_v1  ;;  %v1241_v8 = vadd.f32 1.0, %v1240_v34  ;;  %v1259_v32 = vadd.f32 1.0, %v1258_v30  ;;  %v1261_v26 = vand.u32 2147483647, %v3487_v60  ;;  %v3597_v21 = vsel %vm883_vm1, %v3170_v16, %v1515_v57  ;;  %v812_v34 = vpop.f32.mrf.mxu1 }
 0x158   : > { %4772 = vst [vmem:[#allocation49_spill] sm:$0xff] %v3597_v21  ;;  %v1095_v9 = vmul.f32 0.6931472, %v2421_v36  ;;  %vm839_vm6 = vcmp.gt.f32.partialorder %v3255_v5, 20.0  ;;  %v3601_v17 = vadd.f32 %v720_v59, %v2973_v62  ;;  %v917_v56 = vmul.f32 1.442695, %v3571_v43 }
 0x159   : > { %v1384_v55 = vmul.f32 -0.5, %v3530_v47  ;;  %2442 = vpow2.f32 %v979_v15  ;;  %v1007_v41 = vmul.f32 1.442695, %v3577_v1  ;;  %v3607_v33 = vadd.f32 %v810_v54, %v2951_v48  ;;  %v3609_v30 = vpop.eup %2426  ;;  %v814_v13 = vpop.f32.mrf.mxu1 }
 0x15a   : > { %4773 = vst [vmem:[#allocation50_spill] sm:$0xff] %v3601_v17  ;;  %4775 = vst [vmem:[#allocation52_spill] sm:$0xff] %v3609_v30  ;;  %v1113_v16 = vmul.f32 0.6931472, %v2423_v40  ;;  %vm3611_vm7 = vcmp.lt.f32.partialorder %v1243_v29, 0.0004427343  ;;  %v3617_v36 = vadd.f32 %v759_v39, %v2951_v48  ;;  %v1242_v43 = vmul.f32 %v3467_v19, %v1241_v8  ;;  %v761_v29 = vpop.f32.mrf.mxu0 }
 0x15b   : > { %4774 = vst [vmem:[#allocation51_spill] sm:$0xff] %v3607_v33  ;;  %v1399_v59 = vadd.f32 1.0, %v3586_v27  ;;  %v2429_v57 = vpop.eup %2428  ;;  %v3625_v40 = vmul.f32 %v3487_v60, %v1259_v32  ;;  %v1101_v30 = vsel %vm3554_vm3, %v1098_v49, %v1095_v9  ;;  %vm3631_vm8 = vcmp.lt.f32.partialorder %v1261_v26, 0.0004427343 }
 0x15c   : > { %4778 = vst [vmem:[#allocation53_spill] sm:$0xff] %v3617_v36  ;;  %v3627_v35 = vpop.eup %2430  ;;  %v1011_v15 = vmul.f32 1.442695, %v3601_v17  ;;  %2444 = vpow2.f32 %v917_v56  ;;  %v1318_v54 = vadd.f32 1.0, %v4781_v31  ;;  %vm853_vm9 = vcmp.gt.f32.partialorder %v3297_v23, 20.0 }
 0x15d   : > { %v2433_v1 = vpop.eup %2432  ;;  %v1385_v19 = vadd.f32 1.0, %v1384_v55  ;;  %v1387_v60 = vand.u32 2147483647, %v3530_v47  ;;  %2446 = vpow2.f32 %v1007_v41  ;;  %v921_v8 = vmul.f32 1.442695, %v3607_v33 }
 0x15e   : > { %v3640_v49 = vpop.eup %2434  ;;  %v1119_v32 = vsel %vm3581_vm5, %v1116_v24, %v1113_v16  ;;  %2448 = vlog2.f32 %v1399_v59  ;;  %v919_v26 = vmul.f32 1.442695, %v3617_v36  ;;  %v3646_v9 = vadd.f32 %v761_v29, %v2955_v53  ;;  %v4786_v16 = vld [vmem:[#allocation22_spill] sm:$0xff] }
 0x15f   : > { %v3651_v56 = vsel %vm837_vm4, %v3242_v45, %v1101_v30  ;;  %v1239_v55 = vmul.f32 0.6931472, %v2429_v57  ;;  %vm855_vm10 = vcmp.gt.f32.partialorder %v3320_v4, 20.0  ;;  %v1525_v41 = vadd.f32 1.0, %v3627_v35 }
 0x160   : > { %4782 = vst [vmem:[#allocation20_spill] sm:$0xff] %v3646_v9  ;;  %4783 = vst [vmem:[#allocation54_spill] sm:$0xff] %v3651_v56  ;;  %2450 = vlog2.f32 %v1318_v54  ;;  %v3655_v33 = vpop.eup %2436  ;;  %v1402_v24 = vmul.f32 -0.5, %v3586_v27  ;;  %v3659_v38 = vadd.f32 %v814_v13, %v2955_v53  ;;  %v1462_v59 = vadd.f32 1.0, %v4786_v16 }
 0x161   : > { %4784 = vst [vmem:[#allocation55_spill] sm:$0xff] %v3655_v33  ;;  %2452 = vpow2.f32 %v1011_v15  ;;  %v3665_v45 = vsel %vm839_vm6, %v3255_v5, %v1119_v32  ;;  %v1257_v30 = vmul.f32 0.6931472, %v2433_v1  ;;  %vm3667_vm11 = vcmp.lt.f32.partialorder %v1387_v60, 0.0004427343  ;;  %v3672_v29 = vpop.eup %2438  ;;  %v763_v33 = vpop.f32.mrf.mxu0 }
 0x162   : > { %4785 = vst [vmem:[#allocation56_spill] sm:$0xff] %v3659_v38  ;;  %4787 = vst [vmem:[#allocation22_spill] sm:$0xff] %v3665_v45  ;;  %v1543_v54 = vadd.f32 1.0, %v3640_v49  ;;  %2454 = vpow2.f32 %v921_v8  ;;  %v1386_v15 = vmul.f32 %v3530_v47, %v1385_v19  ;;  %v1405_v13 = vand.u32 2147483647, %v3586_v27 }
 0x163   : > { %2456 = vpow2.f32 %v919_v26  ;;  %v949_v36 = vmul.f32 1.442695, %v3646_v9  ;;  %v2441_v5 = vpop.eup %2440  ;;  %v1245_v1 = vsel %vm3611_vm7, %v1242_v43, %v1239_v55  ;;  %v1528_v60 = vmul.f32 -0.5, %v3627_v35 }
 0x164   : > { %2458 = vlog2.f32 %v1525_v41  ;;  %v3681_v32 = vadd.f32 %v812_v34, %v2951_v48  ;;  %vm869_vm12 = vcmp.gt.f32.partialorder %v3372_v20, 20.0  ;;  %v1403_v8 = vadd.f32 1.0, %v1402_v24  ;;  %v816_v24 = vpop.f32.mrf.mxu1 }
 0x165   : > { %v1546_v47 = vmul.f32 -0.5, %v3640_v49  ;;  %v953_v19 = vmul.f32 1.442695, %v3659_v38  ;;  %2460 = vlog2.f32 %v1462_v59  ;;  %v1263_v26 = vsel %vm3631_vm8, %v3625_v40, %v1257_v30 }
 0x166   : > { %4790 = vst [vmem:[#allocation57_spill] sm:$0xff] %v3681_v32  ;;  %2462 = vlog2.f32 %v1543_v54  ;;  %v3690_v43 = vadd.f32 %v763_v33, %v2955_v53  ;;  %v1336_v55 = vadd.f32 1.0, %v4792_v12  ;;  %v3693_v48 = vpop.eup %2442  ;;  %v3698_v34 = vsel %vm853_vm9, %v3297_v23, %v1245_v1  ;;  %v820_v9 = vpop.f32.mrf.mxu1 }
 0x167   : > { %4793 = vst [vmem:[#allocation21_spill] sm:$0xff] %v3693_v48  ;;  %4794 = vst [vmem:[#allocation59_spill] sm:$0xff] %v3698_v34  ;;  %v1383_v41 = vmul.f32 0.6931472, %v2441_v5  ;;  %2464 = vpow2.f32 %v949_v36  ;;  %v1480_v59 = vadd.f32 1.0, %v3223_v18  ;;  %v1529_v39 = vadd.f32 1.0, %v1528_v60 }
 0x168   : > { %4791 = vst [vmem:[#allocation58_spill] sm:$0xff] %v3690_v43  ;;  %v923_v40 = vmul.f32 1.442695, %v3681_v32  ;;  %v1321_v33 = vmul.f32 -0.5, %v4781_v31  ;;  %2466 = vlog2.f32 %v1336_v55  ;;  %v3706_v30 = vsel %vm855_vm10, %v3320_v4, %v1263_v26 }
 0x169   : > { %4795 = vst [vmem:[#allocation60_spill] sm:$0xff] %v3706_v30  ;;  %v3709_v54 = vmul.f32 %v3586_v27, %v1403_v8  ;;  %v1547_v23 = vadd.f32 1.0, %v1546_v47  ;;  %2468 = vpow2.f32 %v953_v19  ;;  %v3711_v36 = vpop.eup %2444  ;;  %v1531_v5 = vand.u32 2147483647, %v3627_v35 }
 0x16a   : > { %v951_v1 = vmul.f32 1.442695, %v3690_v43  ;;  %v3716_v60 = vadd.f32 %v816_v24, %v2955_v53  ;;  %2470 = vlog2.f32 %v1480_v59  ;;  %v3718_v55 = vpop.eup %2446  ;;  %v1389_v27 = vsel %vm3667_vm11, %v1386_v15, %v1383_v41  ;;  %v4799_v53 = vld [vmem:[#allocation12_spill] sm:$0xff]  ;;  %v767_v15 = vpop.f32.mrf.mxu0  ;;  %v4800_v41 = vld [vmem:[#allocation14_spill] sm:$0xff] }
 0x16b   : > { %vm3724_vm13 = vcmp.lt.f32.partialorder %v1405_v13, 0.0004427343  ;;  %v1549_v47 = vand.u32 2147483647, %v3640_v49  ;;  %v1465_v19 = vmul.f32 -0.5, %v4786_v16  ;;  %v2449_v26 = vpop.eup %2448  ;;  %vm862_vm14 = vcmp.gt.f32.partialorder %v4799_v53, 20.0 }
 0x16c   : > { %4796 = vst [vmem:[#allocation61_spill] sm:$0xff] %v3716_v60  ;;  %v3734_v59 = vmul.f32 %v3627_v35, %v1529_v39  ;;  %2472 = vpow2.f32 %v923_v40  ;;  %v1322_v57 = vadd.f32 1.0, %v1321_v33  ;;  %vm878_vm15 = vcmp.gt.f32.partialorder %v4800_v41, 20.0 }
 0x16d   : > { %v2451_v13 = vpop.eup %2450  ;;  %v3738_v4 = vmul.f32 %v3640_v49, %v1547_v23  ;;  %v1129_v32 = vadd.f32 1.0, %v3711_v36  ;;  %v1324_v38 = vand.u32 2147483647, %v4781_v31  ;;  %v1339_v43 = vmul.f32 -0.5, %v4792_v12 }
 0x16e   : > { %v3743_v24 = vpop.eup %2452  ;;  %v3748_v35 = vsel %vm869_vm12, %v3372_v20, %v1389_v27  ;;  %2474 = vpow2.f32 %v951_v1  ;;  %v3751_v39 = vmul.f32 1.442695, %v3716_v60  ;;  %v1320_v49 = vmul.f32 0.6931472, %v2451_v13  ;;  %v4803_v13 = vld [vmem:[#allocation16_spill] sm:$0xff] }
 0x16f   : > { %4801 = vst [vmem:[#allocation12_spill] sm:$0xff] %v3743_v24  ;;  %v3753_v40 = vpop.eup %2454  ;;  %v3755_v33 = vmul.f32 0.6931472, %v2449_v26  ;;  %v1466_v23 = vadd.f32 1.0, %v1465_v19  ;;  %v1483_v45 = vmul.f32 -0.5, %v3223_v18  ;;  %v3759_v30 = vadd.f32 %v767_v15, %v2953_v52 }
 0x170   : > { %v3761_v56 = vpop.eup %2456  ;;  %v1323_v20 = vmul.f32 %v4781_v31, %v1322_v57  ;;  %v1468_v1 = vand.u32 2147483647, %v4786_v16  ;;  %v3766_v27 = vadd.f32 %v820_v9, %v2953_v52  ;;  %v1030_v60 = vadd.f32 1.0, %v4803_v13  ;;  %v4807_v31 = vld [vmem:[#allocation15_spill] sm:$0xff] }
 0x171   : > { %4802 = vst [vmem:[#allocation14_spill] sm:$0xff] %v3761_v56  ;;  %v2459_v34 = vpop.eup %2458  ;;  %2476 = vlog2.f32 %v1129_v32  ;;  %v1132_v19 = vmul.f32 -0.5, %v3711_v36  ;;  %vm3770_vm1 = vcmp.lt.f32.partialorder %v1324_v38, 0.0004427343  ;;  %v1340_v15 = vadd.f32 1.0, %v1339_v43  ;;  %v4806_v56 = vld [vmem:[#allocation13_spill] sm:$0xff] }
 0x172   : > { %v2461_v17 = vpop.eup %2460  ;;  %vm864_vm2 = vcmp.gt.f32.partialorder %v4806_v56, 20.0  ;;  %vm880_vm3 = vcmp.gt.f32.partialorder %v4807_v31, 20.0  ;;  %v1326_v9 = vsel %vm3770_vm1, %v1323_v20, %v1320_v49  ;;  %v1342_v57 = vand.u32 2147483647, %v4792_v12 }
 0x173   : > { %v981_v3 = vmul.f32 1.442695, %v3759_v30  ;;  %2478 = vlog2.f32 %v1030_v60  ;;  %v2463_v32 = vpop.eup %2462  ;;  %vm3780_vm4 = vcmp.lt.f32.partialorder %v1531_v5, 0.0004427343  ;;  %v1464_v24 = vmul.f32 0.6931472, %v2461_v17 }
 0x174   : > { %v1467_v43 = vmul.f32 %v4786_v16, %v1466_v23  ;;  %v1484_v25 = vadd.f32 1.0, %v1483_v45  ;;  %v985_v21 = vmul.f32 1.442695, %v3766_v27  ;;  %v3786_v48 = vpop.eup %2464  ;;  %v1407_v49 = vsel %vm3724_vm13, %v3709_v54, %v3755_v33  ;;  %v4822_v23 = vld [vmem:[#allocation10_spill] sm:$0xff] }
 0x175   : > { %v1527_v20 = vmul.f32 0.6931472, %v2459_v34  ;;  %vm3792_vm5 = vcmp.lt.f32.partialorder %v1549_v47, 0.0004427343  ;;  %vm1469_vm6 = vcmp.lt.f32.partialorder %v1468_v1, 0.0004427343  ;;  %2480 = vpow2.f32 %v981_v3  ;;  %v2467_v17 = vpop.eup %2466 }
 0x176   : > { %vm871_vm7 = vcmp.gt.f32.partialorder %v3427_v7, 20.0  ;;  %v1470_v16 = vsel %vm1469_vm6, %v1467_v43, %v1464_v24  ;;  %v1630_v45 = vsel %vm862_vm14, %v4799_v53, %v1326_v9  ;;  %v1341_v5 = vmul.f32 %v4792_v12, %v1340_v15  ;;  %v3802_v54 = vpop.eup %2468  ;;  %v4813_v47 = vld [vmem:[#allocation18_spill] sm:$0xff] }
 0x177   : > { %v1486_v8 = vand.u32 2147483647, %v3223_v18  ;;  %4812 = vst [vmem:[#allocation16_spill] sm:$0xff] %v3802_v54  ;;  %vm885_vm8 = vcmp.gt.f32.partialorder %v3479_v51, 20.0  ;;  %v1646_v3 = vsel %vm878_vm15, %v4800_v41, %v1470_v16  ;;  %v1338_v34 = vmul.f32 0.6931472, %v2467_v17  ;;  %v2471_v33 = vpop.eup %2470 }
 0x178   : > { %2482 = vpow2.f32 %v985_v21  ;;  %v1174_v24 = vadd.f32 1.0, %v4813_v47  ;;  %vm887_vm9 = vcmp.gt.f32.partialorder %v3491_v0, 20.0  ;;  %v1273_v53 = vadd.f32 1.0, %v3786_v48  ;;  %v4816_v21 = vld [vmem:[#allocation17_spill] sm:$0xff] }
 0x179   : > { %v1680_v12 = vpack.c.bf16 %v1646_v3, %v1630_v45  ;;  %vm3811_vm10 = vcmp.lt.f32.partialorder %v1342_v57, 0.0004427343  ;;  %v1485_v1 = vmul.f32 %v3223_v18, %v1484_v25  ;;  %v1482_v41 = vmul.f32 0.6931472, %v2471_v33  ;;  %v3819_v9 = vpop.eup %2472  ;;  %v4818_v25 = vld [vmem:[#allocation19_spill] sm:$0xff] }
 0x17a   : > { %v1344_v26 = vsel %vm3811_vm10, %v1341_v5, %v1338_v34  ;;  %2484 = vlog2.f32 %v1174_v24  ;;  %v1048_v15 = vadd.f32 1.0, %v4816_v21  ;;  %v1545_v43 = vmul.f32 0.6931472, %v2463_v32 }
 0x17b   : > { %v1147_v17 = vadd.f32 1.0, %v3753_v40  ;;  %v1150_v16 = vmul.f32 -0.5, %v3753_v40  ;;  %1727 = vmatprep.subr.bf16.mxu0 %v1680_v12  ;;  %vm1487_vm11 = vcmp.lt.f32.partialorder %v1486_v8, 0.0004427343  ;;  %v1291_v57 = vadd.f32 1.0, %v3802_v54  ;;  %v3828_v3 = vpop.eup %2474  ;;  %v4821_v12 = vld [vmem:[#allocation8_spill] sm:$0xff] }
 0x17c   : > { %v1488_v45 = vsel %vm1487_vm11, %v1485_v1, %v1482_v41  ;;  %v4817_v18 = vpack.c.bf16 %v3307_v42, %v3285_v28  ;;  %2486 = vlog2.f32 %v1048_v15  ;;  %v1192_v5 = vadd.f32 1.0, %v4818_v25 }
 0x17d   : > { %v1133_v34 = vadd.f32 1.0, %v1132_v19  ;;  %2488 = vlog2.f32 %v1273_v53  ;;  %v1632_v32 = vsel %vm864_vm2, %v4806_v56, %v1344_v26  ;;  %v1648_v8 = vsel %vm880_vm3, %v4807_v31, %v1488_v45 }
 0x17e   : > { %1728 = vmatpush1.bf16.msra.mxu0 %v4817_v18  ;;  %v1533_v28 = vsel %vm3780_vm4, %v3734_v59, %v1527_v20  ;;  %v1682_v42 = vpack.c.bf16 %v1648_v8, %v1632_v32  ;;  %v1033_v24 = vmul.f32 -0.5, %v4803_v13  ;;  %2490 = vlog2.f32 %v1192_v5  ;;  %v2477_v53 = vpop.eup %2476  ;;  %v3852_v20 = vpop.f32.mrf.mxu0 }
 0x17f   : > { %v1551_v19 = vsel %vm3792_vm5, %v3738_v4, %v1545_v43  ;;  %v1151_v33 = vadd.f32 1.0, %v1150_v16  ;;  %2492 = vpow2.f32 %v3751_v39  ;;  %v1177_v56 = vmul.f32 -0.5, %v4813_v47 }
 0x180   : > { %v3848_v31 = vsel %vm871_vm7, %v3427_v7, %v1407_v49  ;;  %v1135_v59 = vand.u32 2147483647, %v3711_v36  ;;  %2494 = vlog2.f32 %v1291_v57  ;;  %1770 = vmatprep.subr.bf16.mxu1 %v1682_v42  ;;  %v2479_v4 = vpop.eup %2478  ;;  %v3857_v39 = vsel %vm885_vm8, %v3479_v51, %v1533_v28  ;;  %v771_v18 = vpop.f32.mrf.mxu0  ;;  %v4827_v42 = vld [vmem:[#allocation9_spill] sm:$0xff] }
 0x181   : > { %v3860_v60 = vmul.f32 %v3711_v36, %v1133_v34  ;;  %2496 = vlog2.f32 %v1147_v17  ;;  %v1276_v7 = vmul.f32 -0.5, %v3786_v48  ;;  %v4820_v49 = vpack.c.bf16 %v3327_v6, %v3302_v61 }
 0x182   : > { %vm830_vm12 = vcmp.gt.f32.partialorder %v4821_v12, 20.0  ;;  %vm846_vm13 = vcmp.gt.f32.partialorder %v4822_v23, 20.0  ;;  %v3871_v1 = vsel %vm887_vm9, %v3491_v0, %v1551_v19  ;;  %v1294_v51 = vmul.f32 -0.5, %v3802_v54  ;;  %v3875_v41 = vpop.eup %2480 }
 0x183   : > { %4819 = vst [vmem:[#allocation13_spill] sm:$0xff] %v3860_v60  ;;  %1771 = vmatpush1.bf16.msra.mxu1 %v4820_v49  ;;  %v1034_v36 = vadd.f32 1.0, %v1033_v24  ;;  %v1051_v26 = vmul.f32 -0.5, %v4816_v21  ;;  %v3878_v15 = vmul.f32 %v3753_v40, %v1151_v33  ;;  %v1036_v61 = vand.u32 2147483647, %v4803_v13  ;;  %v4828_v24 = vld [vmem:[#allocation11_spill] sm:$0xff] }
 0x184   : > { %v1178_v6 = vadd.f32 1.0, %v1177_v56  ;;  %v1195_v43 = vmul.f32 -0.5, %v4818_v25  ;;  %vm3884_vm14 = vcmp.lt.f32.partialorder %v1135_v59, 0.0004427343  ;;  %v4824_v0 = vmov 0 }
 0x185   : > { %4823 = vst [vmem:[#allocation15_spill] sm:$0xff] %v3878_v15  ;;  %v4825_v0 = vsel %vm3884_vm14, 4294967295, %v4824_v0  ;;  %v1279_v16 = vand.u32 2147483647, %v3786_v48  ;;  %v1417_v57 = vadd.f32 1.0, %v3875_v41  ;;  %v3890_v5 = vpop.eup %2482  ;;  %v1277_v32 = vadd.f32 1.0, %v1276_v7 }
 0x186   : > { %4826 = vst [vmem:[#allocation18_spill] sm:$0xff] %v4825_v0  ;;  %v1032_v45 = vmul.f32 0.6931472, %v2479_v4  ;;  %v1180_v28 = vand.u32 2147483647, %v4813_v47  ;;  %vm832_vm15 = vcmp.gt.f32.partialorder %v4827_v42, 20.0  ;;  %v1035_v33 = vmul.f32 %v4803_v13, %v1034_v36  ;;  %v822_v36 = vpop.f32.mrf.mxu1 }
 0x187   : > { %vm848_vm1 = vcmp.gt.f32.partialorder %v4828_v24, 20.0  ;;  %v1295_v19 = vadd.f32 1.0, %v1294_v51  ;;  %v1052_v56 = vadd.f32 1.0, %v1051_v26  ;;  %v1054_v59 = vand.u32 2147483647, %v4816_v21  ;;  %v2485_v4 = vpop.eup %2484  ;;  %v4883_v0 = vld [vmem:[#allocation52_spill] sm:$0xff] }
 0x188   : > { %vm3900_vm2 = vcmp.lt.f32.partialorder %v1036_v61, 0.0004427343  ;;  %v1179_v7 = vmul.f32 %v4813_v47, %v1178_v6  ;;  %v1196_v8 = vadd.f32 1.0, %v1195_v43  ;;  %v3906_v38 = vadd.f32 %v771_v18, %v2973_v62 }
 0x189   : > { %2498 = vlog2.f32 %v1417_v57  ;;  %v1435_v34 = vadd.f32 1.0, %v3890_v5  ;;  %v1038_v13 = vsel %vm3900_vm2, %v1035_v33, %v1032_v45  ;;  %v1176_v51 = vmul.f32 0.6931472, %v2485_v4  ;;  %v2487_v26 = vpop.eup %2486  ;;  %v824_v4 = vpop.f32.mrf.mxu1 }
 0x18a   : > { %v3911_v17 = vmul.f32 0.6931472, %v2477_v53  ;;  %v3914_v61 = vmul.f32 %v3786_v48, %v1277_v32  ;;  %vm1181_vm3 = vcmp.lt.f32.partialorder %v1180_v28, 0.0004427343  ;;  %v1198_v47 = vand.u32 2147483647, %v4818_v25  ;;  %v2489_v6 = vpop.eup %2488 }
 0x18b   : > { %v1182_v43 = vsel %vm1181_vm3, %v1179_v7, %v1176_v51  ;;  %v1050_v18 = vmul.f32 0.6931472, %v2487_v26  ;;  %v1053_v57 = vmul.f32 %v4816_v21, %v1052_v56  ;;  %vm3918_vm4 = vcmp.lt.f32.partialorder %v1054_v59, 0.0004427343  ;;  %v2491_v45 = vpop.eup %2490 }
 0x18c   : > { %4831 = vst [vmem:[#allocation17_spill] sm:$0xff] %v3911_v17  ;;  %vm3922_vm5 = vcmp.lt.f32.partialorder %v1279_v16, 0.0004427343  ;;  %v1598_v48 = vsel %vm830_vm12, %v4821_v12, %v1038_v13  ;;  %v1614_v53 = vsel %vm846_vm13, %v4822_v23, %v1182_v43  ;;  %v1197_v32 = vmul.f32 %v4818_v25, %v1196_v8  ;;  %v3934_v28 = vpop.eup %2492 }
 0x18d   : > { %v1013_v21 = vmul.f32 1.442695, %v3906_v38  ;;  %2500 = vlog2.f32 %v1435_v34  ;;  %v1664_v56 = vpack.c.bf16 %v1614_v53, %v1598_v48  ;;  %v1056_v16 = vsel %vm3918_vm4, %v1053_v57, %v1050_v18  ;;  %v2495_v49 = vpop.eup %2494  ;;  %v826_v18 = vpop.f32.mrf.mxu1 }
 0x18e   : > { %v1194_v59 = vmul.f32 0.6931472, %v2491_v45  ;;  %v3943_v23 = vmul.f32 %v3802_v54, %v1295_v19  ;;  %vm1199_vm6 = vcmp.lt.f32.partialorder %v1198_v47, 0.0004427343  ;;  %v1354_v25 = vadd.f32 1.0, %v3454_v14  ;;  %v3946_v8 = vpop.eup %2496  ;;  %v3960_v19 = vld [vmem:[%s4586_s3] sm:$0xff]  }
 0x18f   : > { %v3948_v34 = vmul.f32 0.6931472, %v2489_v6  ;;  %1729 = vmatprep.subr.bf16.mxu0 %v1664_v56  ;;  %v3952_v7 = vadd.f32 %v3852_v20, %v2953_v52  ;;  %v3955_v13 = vadd.f32 %v822_v36, %v2953_v52  ;;  %v1600_v51 = vsel %vm832_vm15, %v4827_v42, %v1056_v16  ;;  %v773_v52 = vpop.f32.mrf.mxu0  ;;  %v4852_v54 = vld [vmem:[#allocation29_spill] sm:$0xff] }
 0x190   : > { %4836 = vst [vmem:[#allocation19_spill] sm:$0xff] %v3943_v23  ;;  %v1200_v15 = vsel %vm1199_vm6, %v1197_v32, %v1194_v59  ;;  %2502 = vpow2.f32 %v1013_v21  ;;  %v4838_v20 = vpack.c.bf16 %v3234_v2, %v3247_v58  ;;  %v1498_v36 = vadd.f32 1.0, %v3509_v46 }
 0x191   : > { %4837 = vst [vmem:[#allocation8_spill] sm:$0xff] %v3948_v34  ;;  %v1616_v26 = vsel %vm848_vm1, %v4828_v24, %v1200_v15  ;;  %v3972_v47 = vmul.f32 0.6931472, %v2495_v49  ;;  %v3975_v43 = vadd.f32 %v824_v4, %v2973_v62  ;;  %2504 = vlog2.f32 %v1354_v25  ;;  %v4844_v15 = vld [vmem:[#allocation30_spill] sm:$0xff] }
 0x192   : > { %1730 = vmatpush1.bf16.msra.mxu0 %v4838_v20  ;;  %v1666_v6 = vpack.c.bf16 %v1616_v26, %v1600_v51  ;;  %v1420_v42 = vmul.f32 -0.5, %v3875_v41  ;;  %v1423_v24 = vand.u32 2147483647, %v3875_v41  ;;  %2506 = vlog2.f32 %v1498_v36 }
 0x193   : > { %4839 = vst [vmem:[#allocation10_spill] sm:$0xff] %v3972_v47  ;;  %v1372_v57 = vadd.f32 1.0, %v3493_v50  ;;  %v1438_v2 = vmul.f32 -0.5, %v3890_v5  ;;  %v983_v58 = vmul.f32 1.442695, %v3952_v7  ;;  %v3983_v45 = vadd.f32 %v773_v52, %v2973_v62 }
 0x194   : > { %1772 = vmatprep.subr.bf16.mxu1 %v1666_v6  ;;  %v1516_v48 = vadd.f32 1.0, %v3542_v37  ;;  %v987_v53 = vmul.f32 1.442695, %v3955_v13  ;;  %v4840_v32 = vpack.c.bf16 %v3252_v63, %v3266_v22  ;;  %v3993_v21 = vadd.f32 %v826_v18, %v2973_v62 }
 0x195   : > { %2223 = vmatmul.mubr.msk.bf16.vlgmr.msra.gmra.mxu0 %vm398_vm0, %v3960_v19  ;;  %v1357_v56 = vmul.f32 -0.5, %v3454_v14  ;;  %2508 = vlog2.f32 %v1372_v57  ;;  %v4841_v16 = vmov 0   ;;  %v1017_v4 = vmul.f32 1.442695, %v3975_v43 }
 0x196   : > { %1773 = vmatpush1.bf16.msra.mxu1 %v4840_v32  ;;  %1833 = vmatprep.mubr.bf16.mxu0 %v4841_v16  ;;  %v1501_v49 = vmul.f32 -0.5, %v3509_v46  ;;  %2510 = vlog2.f32 %v1516_v48  ;;  %v2499_v63 = vpop.eup %2498  ;;  %v1421_v22 = vadd.f32 1.0, %v1420_v42  ;;  %vm4003_vm7 = vcmp.lt.f32.partialorder %v1423_v24, 0.0004427343  ;;  %v4846_v48 = vld [vmem:[#allocation33_spill] sm:$0xff] }
 0x197   : > { %v1441_v25 = vand.u32 2147483647, %v3890_v5  ;;  %v1066_v51 = vadd.f32 1.0, %v4844_v15  ;;  %vm873_vm8 = vcmp.gt.f32.partialorder %v3759_v30, 20.0  ;;  %v1439_v26 = vadd.f32 1.0, %v1438_v2 }
 0x198   : > { %2512 = vpow2.f32 %v983_v58  ;;  %v1015_v20 = vmul.f32 1.442695, %v3983_v45  ;;  %v1375_v52 = vmul.f32 -0.5, %v3493_v50  ;;  %v1019_v36 = vmul.f32 1.442695, %v3993_v21  ;;  %v4845_v58 = vld [vmem:[#allocation28_spill] sm:$0xff] }
 0x199   : > { %2224 = vmatmul.mubr.msk.bf16.vlgmr.msra.gmra.mxu1 %vm398_vm0, %v3960_v19  ;;  %2514 = vpow2.f32 %v987_v53  ;;  %v1358_v6 = vadd.f32 1.0, %v1357_v56  ;;  %v1360_v18 = vand.u32 2147483647, %v3454_v14  ;;  %v1419_v42 = vmul.f32 0.6931472, %v2499_v63  ;;  %v4847_v56 = vld [vmem:[#allocation32_spill] sm:$0xff] }
 0x19a   : > { %1876 = vmatprep.mubr.bf16.mxu1 %v4841_v16  ;;  %2516 = vpow2.f32 %v1017_v4  ;;  %v1502_v24 = vadd.f32 1.0, %v1501_v49  ;;  %v1504_v57 = vand.u32 2147483647, %v3509_v46  ;;  %v2501_v2 = vpop.eup %2500  ;;  %vm866_vm9 = vcmp.gt.f32.partialorder %v4845_v58, 20.0 }
 0x19b   : > { %vm882_vm10 = vcmp.gt.f32.partialorder %v4846_v48, 20.0  ;;  %v1378_v32 = vand.u32 2147483647, %v3493_v50  ;;  %v1519_v53 = vmul.f32 -0.5, %v3542_v37  ;;  %2518 = vlog2.f32 %v1066_v51 }
 0x19c   : > { %v1210_v12 = vadd.f32 1.0, %v4847_v56  ;;  %v1422_v59 = vmul.f32 %v3875_v41, %v1421_v22  ;;  %vm4024_vm11 = vcmp.lt.f32.partialorder %v1441_v25, 0.0004427343  ;;  %2520 = vpow2.f32 %v1015_v20 }
 0x19d   : > { %v1376_v4 = vadd.f32 1.0, %v1375_v52  ;;  %v4029_v49 = vmul.f32 %v3890_v5, %v1439_v26  ;;  %2522 = vpow2.f32 %v1019_v36  ;;  %v1359_v23 = vmul.f32 %v3454_v14, %v1358_v6  ;;  %v4036_v51 = vpop.eup %2502  ;;  %v4857_v52 = vld [vmem:[#allocation31_spill] sm:$0xff] }
 0x19e   : > { %vm4032_vm12 = vcmp.lt.f32.partialorder %v1360_v18, 0.0004427343  ;;  %vm868_vm13 = vcmp.gt.f32.partialorder %v4852_v54, 20.0  ;;  %vm884_vm15 = vcmp.gt.f32.partialorder %v3384_v44, 20.0  ;;  %v1425_v41 = vsel %vm4003_vm7, %v1422_v59, %v1419_v42  ;;  %v2505_v25 = vpop.eup %2504 }
 0x19f   : > { %v4042_v22 = vmul.f32 0.6931472, %v2501_v2  ;;  %v1503_v5 = vmul.f32 %v3509_v46, %v1502_v24  ;;  %2524 = vlog2.f32 %v1210_v12  ;;  %vm4045_vm1 = vcmp.lt.f32.partialorder %v1504_v57, 0.0004427343  ;;  %v2507_v6 = vpop.eup %2506 }
 0x1a0   : > { %vm4049_vm2 = vcmp.lt.f32.partialorder %v1378_v32, 0.0004427343  ;;  %v1520_v20 = vadd.f32 1.0, %v1519_v53  ;;  %v1084_v36 = vadd.f32 1.0, %v4857_v52  ;;  %v1356_v62 = vmul.f32 0.6931472, %v2505_v25 }
 0x1a1   : > { %v1377_v59 = vmul.f32 %v3493_v50, %v1376_v4  ;;  %v1522_v18 = vand.u32 2147483647, %v3542_v37  ;;  %v1069_v46 = vmul.f32 -0.5, %v4844_v15  ;;  %v4060_v12 = vsel %vm873_vm8, %v3759_v30, %v1425_v41  ;;  %v4858_v53 = vld [vmem:[#allocation35_spill] sm:$0xff] }
 0x1a2   : > { %v1500_v42 = vmul.f32 0.6931472, %v2507_v6  ;;  %v1072_v24 = vand.u32 2147483647, %v4844_v15  ;;  %2526 = vlog2.f32 %v1084_v36  ;;  %v2509_v57 = vpop.eup %2508  ;;  %v1561_v50 = vadd.f32 1.0, %v4036_v51 }
 0x1a3   : > { %v1362_v32 = vsel %vm4032_vm12, %v1359_v23, %v1356_v62  ;;  %v1228_v4 = vadd.f32 1.0, %v4858_v53  ;;  %v2511_v25 = vpop.eup %2510  ;;  %v1374_v41 = vmul.f32 0.6931472, %v2509_v57  ;;  %v1521_v36 = vmul.f32 %v3542_v37, %v1520_v20 }
 0x1a4   : > { %v1506_v30 = vsel %vm4045_vm1, %v1503_v5, %v1500_v42  ;;  %v1213_v6 = vmul.f32 -0.5, %v4847_v56  ;;  %v1634_v2 = vsel %vm866_vm9, %v4845_v58, %v1362_v32  ;;  %v1518_v23 = vmul.f32 0.6931472, %v2511_v25  ;;  %v4859_v42 = vld [vmem:[#allocation24_spill] sm:$0xff]  ;;  %v4860_v58 = vld [vmem:[#allocation26_spill] sm:$0xff] }
 0x1a5   : > { %v1650_v47 = vsel %vm882_vm10, %v4846_v48, %v1506_v30  ;;  %2528 = vlog2.f32 %v1228_v4  ;;  %v4081_v62 = vpop.eup %2512  ;;  %v1564_v14 = vmul.f32 -0.5, %v4036_v51  ;;  %v1380_v37 = vsel %vm4049_vm2, %v1377_v59, %v1374_v41 }
 0x1a6   : > { %v1684_v5 = vpack.c.bf16 %v1650_v47, %v1634_v2  ;;  %vm1523_vm3 = vcmp.lt.f32.partialorder %v1522_v18, 0.0004427343  ;;  %v4086_v20 = vpop.eup %2514  ;;  %vm834_vm4 = vcmp.gt.f32.partialorder %v4859_v42, 20.0  ;;  %vm850_vm6 = vcmp.gt.f32.partialorder %v4860_v58, 20.0 }
 0x1a7   : > { %2530 = vlog2.f32 %v1561_v50  ;;  %v1524_v57 = vsel %vm1523_vm3, %v1521_v36, %v1518_v23  ;;  %v1070_v48 = vadd.f32 1.0, %v1069_v46  ;;  %v1390_v32 = vadd.f32 1.0, %v3672_v29  ;;  %v4091_v4 = vpop.eup %2516 }
 0x1a8   : > { %1813 = vmatprep.subr.bf16.mxu0 %v1684_v5  ;;  %v1636_v26 = vsel %vm868_vm13, %v4852_v54, %v1380_v37  ;;  %v1652_v59 = vsel %vm884_vm15, %v3384_v44, %v1524_v57  ;;  %v1214_v18 = vadd.f32 1.0, %v1213_v6  ;;  %v1216_v2 = vand.u32 2147483647, %v4847_v56  ;;  %v2519_v25 = vpop.eup %2518  ;;  %v4862_v6 = vld [vmem:[#allocation21_spill] sm:$0xff] }
 0x1a9   : > { %v1686_v50 = vpack.c.bf16 %v1652_v59, %v1636_v26  ;;  %v4861_v46 = vpack.c.bf16 %v3591_v10, %v3526_v11  ;;  %v1087_v30 = vmul.f32 -0.5, %v4857_v52  ;;  %2532 = vlog2.f32 %v1390_v32  ;;  %v4105_v36 = vpop.eup %2520  ;;  %v4865_v59 = vld [vmem:[#allocation49_spill] sm:$0xff] }
 0x1aa   : > { %v1534_v41 = vadd.f32 1.0, %v3718_v55  ;;  %v1567_v54 = vand.u32 2147483647, %v4036_v51  ;;  %v1068_v47 = vmul.f32 0.6931472, %v2519_v25  ;;  %v1231_v44 = vmul.f32 -0.5, %v4858_v53  ;;  %v4110_v5 = vpop.eup %2522 }
 0x1ab   : > { %1814 = vmatpush1.bf16.msra.mxu0 %v4861_v46  ;;  %v1408_v23 = vadd.f32 1.0, %v4862_v6  ;;  %v1565_v37 = vadd.f32 1.0, %v1564_v14  ;;  %1856 = vmatprep.subr.bf16.mxu1 %v1686_v50  ;;  %v1071_v11 = vmul.f32 %v4844_v15, %v1070_v48  ;;  %vm4113_vm7 = vcmp.lt.f32.partialorder %v1072_v24, 0.0004427343  ;;  %v4866_v25 = vld [vmem:[#allocation46_spill] sm:$0xff]  ;;  %v4868_v14 = vld [vmem:[#allocation25_spill] sm:$0xff] }
 0x1ac   : > { %2534 = vlog2.f32 %v1534_v41  ;;  %v2525_v57 = vpop.eup %2524  ;;  %v1579_v32 = vadd.f32 1.0, %v4091_v4  ;;  %v4867_v46 = vpack.c.bf16 %v4865_v59, %v4866_v25  ;;  %v1215_v17 = vmul.f32 %v4847_v56, %v1214_v18  ;;  %v4869_v15 = vld [vmem:[#allocation27_spill] sm:$0xff] }
 0x1ad   : > { %2536 = vlog2.f32 %v1408_v23  ;;  %vm836_vm8 = vcmp.gt.f32.partialorder %v4868_v14, 20.0  ;;  %vm852_vm9 = vcmp.gt.f32.partialorder %v4869_v15, 20.0  ;;  %v1074_v24 = vsel %vm4113_vm7, %v1071_v11, %v1068_v47 }
 0x1ae   : > { %1857 = vmatpush1.bf16.msra.mxu1 %v4867_v46  ;;  %v1212_v48 = vmul.f32 0.6931472, %v2525_v57  ;;  %vm1217_vm10 = vcmp.lt.f32.partialorder %v1216_v2, 0.0004427343  ;;  %v1088_v50 = vadd.f32 1.0, %v1087_v30  ;;  %v1582_v41 = vmul.f32 -0.5, %v4091_v4 }
 0x1af   : > { %v1090_v26 = vand.u32 2147483647, %v4857_v52  ;;  %v1232_v60 = vadd.f32 1.0, %v1231_v44  ;;  %v1234_v59 = vand.u32 2147483647, %v4858_v53  ;;  %v2527_v25 = vpop.eup %2526  ;;  %v4131_v56 = vmul.f32 %v4036_v51, %v1565_v37  ;;  %v4870_v46 = vld [vmem:[#allocation12_spill] sm:$0xff] }
 0x1b0   : > { %v1218_v18 = vsel %vm1217_vm10, %v1215_v17, %v1212_v48  ;;  %v1393_v23 = vmul.f32 -0.5, %v3672_v29  ;;  %v1552_v10 = vadd.f32 1.0, %v4870_v46  ;;  %v1602_v2 = vsel %vm834_vm4, %v4859_v42, %v1074_v24  ;;  %v4878_v48 = vld [vmem:[#allocation48_spill] sm:$0xff] }
 0x1b1   : > { %v1618_v30 = vsel %vm850_vm6, %v4860_v58, %v1218_v18  ;;  %v1086_v47 = vmul.f32 0.6931472, %v2527_v25  ;;  %v1537_v44 = vmul.f32 -0.5, %v3718_v55  ;;  %v1089_v51 = vmul.f32 %v4857_v52, %v1088_v50  ;;  %v4877_v52 = vld [vmem:[#allocation42_spill] sm:$0xff] }
 0x1b2   : > { %v1668_v11 = vpack.c.bf16 %v1618_v30, %v1602_v2  ;;  %v1396_v17 = vand.u32 2147483647, %v3672_v29  ;;  %2538 = vlog2.f32 %v1552_v10  ;;  %v2529_v37 = vpop.eup %2528  ;;  %vm4144_vm12 = vcmp.lt.f32.partialorder %v1567_v54, 0.0004427343  ;;  %v4880_v10 = vld [vmem:[#allocation37_spill] sm:$0xff]  ;;  %v4881_v2 = vld [vmem:[#allocation39_spill] sm:$0xff] }
 0x1b3   : > { %2540 = vlog2.f32 %v1579_v32  ;;  %vm4148_vm13 = vcmp.lt.f32.partialorder %v1090_v26, 0.0004427343  ;;  %v1233_v58 = vmul.f32 %v4858_v53, %v1232_v60  ;;  %vm4153_vm15 = vcmp.lt.f32.partialorder %v1234_v59, 0.0004427343  ;;  %v4879_v26 = vld [vmem:[#allocation44_spill] sm:$0xff] }
 0x1b4   : > { %vm870_vm1 = vcmp.gt.f32.partialorder %v4877_v52, 20.0  ;;  %vm886_vm2 = vcmp.gt.f32.partialorder %v4878_v48, 20.0  ;;  %1815 = vmatprep.subr.bf16.mxu0 %v1668_v11  ;;  %v1092_v54 = vsel %vm4148_vm13, %v1089_v51, %v1086_v47  ;;  %v1230_v50 = vmul.f32 0.6931472, %v2529_v37  ;;  %v2531_v18 = vpop.eup %2530 }
 0x1b5   : > { %v1394_v32 = vadd.f32 1.0, %v1393_v23  ;;  %v1102_v25 = vadd.f32 1.0, %v4879_v26  ;;  %v4882_v60 = vpack.c.bf16 %v4880_v10, %v4881_v2  ;;  %v1538_v53 = vadd.f32 1.0, %v1537_v44  ;;  %v4889_v10 = vld [vmem:[#allocation43_spill] sm:$0xff]  ;;  %v4890_v2 = vld [vmem:[#allocation50_spill] sm:$0xff] }
 0x1b6   : > { %v1540_v59 = vand.u32 2147483647, %v3718_v55  ;;  %v1411_v30 = vmul.f32 -0.5, %v4862_v6  ;;  %v1246_v34 = vadd.f32 1.0, %v4883_v0  ;;  %v4168_v11 = vadd.f32 1.0, %v1582_v41  ;;  %v2533_v51 = vpop.eup %2532 }
 0x1b7   : > { %1816 = vmatpush1.bf16.msra.mxu0 %v4882_v60  ;;  %v1236_v47 = vsel %vm4153_vm15, %v1233_v58, %v1230_v50  ;;  %vm4172_vm3 = vcmp.lt.f32.partialorder %v1396_v17, 0.0004427343  ;;  %2542 = vlog2.f32 %v1102_v25  ;;  %v1604_v44 = vsel %vm836_vm8, %v4868_v14, %v1092_v54  ;;  %v4888_v25 = vld [vmem:[#allocation45_spill] sm:$0xff]  ;;  %v4891_v60 = vld [vmem:[#allocation55_spill] sm:$0xff]  ;;  %v4897_v54 = vld [vmem:[#allocation34_spill] sm:$0xff] }
 0x1b8   : > { %v1620_v37 = vsel %vm852_vm9, %v4869_v15, %v1236_v47  ;;  %v1555_v41 = vmul.f32 -0.5, %v4870_v46  ;;  %2544 = vlog2.f32 %v1246_v34  ;;  %vm889_vm4 = vcmp.gt.f32.partialorder %v3906_v38, 20.0 }
 0x1b9   : > { %v1563_v42 = vmul.f32 0.6931472, %v2531_v18  ;;  %v1670_v17 = vpack.c.bf16 %v1620_v37, %v1604_v44  ;;  %v1392_v58 = vmul.f32 0.6931472, %v2533_v51  ;;  %v1395_v24 = vmul.f32 %v3672_v29, %v1394_v32  ;;  %v2535_v50 = vpop.eup %2534 }
 0x1ba   : > { %2225 = vmatmul.mubr.msk.bf16.vlgmr.msra.gmra.mxu0 %vm398_vm0, %v3960_v19  ;;  %v1539_v14 = vmul.f32 %v3718_v55, %v1538_v53  ;;  %vm4188_vm6 = vcmp.lt.f32.partialorder %v1540_v59, 0.0004427343  ;;  %v1412_v15 = vadd.f32 1.0, %v1411_v30  ;;  %v1120_v34 = vadd.f32 1.0, %v4888_v25  ;;  %v2537_v18 = vpop.eup %2536  ;;  %v4892_v59 = vld [vmem:[#allocation41_spill] sm:$0xff]  ;;  %v4893_v30 = vld [vmem:[#allocation40_spill] sm:$0xff] }
 0x1bb   : > { %1919 = vmatprep.mubr.bf16.mxu0 %v4841_v16  ;;  %vm872_vm7 = vcmp.gt.f32.partialorder %v4889_v10, 20.0  ;;  %vm888_vm8 = vcmp.gt.f32.partialorder %v4890_v2, 20.0  ;;  %1858 = vmatprep.subr.bf16.mxu1 %v1670_v17  ;;  %v1398_v29 = vsel %vm4172_vm3, %v1395_v24, %v1392_v58  ;;  %v1536_v32 = vmul.f32 0.6931472, %v2535_v50 }
 0x1bc   : > { %v1414_v55 = vand.u32 2147483647, %v4862_v6  ;;  %v1264_v53 = vadd.f32 1.0, %v4891_v60  ;;  %v4894_v47 = vpack.c.bf16 %v4892_v59, %v4893_v30  ;;  %v1556_v51 = vadd.f32 1.0, %v1555_v41 }
 0x1bd   : > { %v1558_v44 = vand.u32 2147483647, %v4870_v46  ;;  %v1105_v37 = vmul.f32 -0.5, %v4879_v26  ;;  %2546 = vlog2.f32 %v1120_v34  ;;  %v1569_v23 = vsel %vm4144_vm12, %v4131_v56, %v1563_v42 }
 0x1be   : > { %1859 = vmatpush1.bf16.msra.mxu1 %v4894_v47  ;;  %v1542_v17 = vsel %vm4188_vm6, %v1539_v14, %v1536_v32  ;;  %v1410_v58 = vmul.f32 0.6931472, %v2537_v18  ;;  %2548 = vlog2.f32 %v1264_v53  ;;  %v1638_v24 = vsel %vm870_vm1, %v4877_v52, %v1398_v29  ;;  %v4906_v29 = vld [vmem:[#allocation14_spill] sm:$0xff] }
 0x1bf   : > { %v1654_v41 = vsel %vm886_vm2, %v4878_v48, %v1542_v17  ;;  %v1108_v50 = vand.u32 2147483647, %v4879_v26  ;;  %v1249_v34 = vmul.f32 -0.5, %v4883_v0  ;;  %v1413_v57 = vmul.f32 %v4862_v6, %v1412_v15  ;;  %v2539_v14 = vpop.eup %2538  ;;  %v4898_v48 = vld [vmem:[#allocation38_spill] sm:$0xff] }
 0x1c0   : > { %v1688_v56 = vpack.c.bf16 %v1654_v41, %v1638_v24  ;;  %vm4221_vm9 = vcmp.lt.f32.partialorder %v1414_v55, 0.0004427343  ;;  %v1426_v52 = vadd.f32 1.0, %v4081_v62  ;;  %vm838_vm10 = vcmp.gt.f32.partialorder %v4897_v54, 20.0  ;;  %v2541_v15 = vpop.eup %2540 }
 0x1c1   : > { %2226 = vmatmul.mubr.msk.bf16.vlgmr.msra.gmra.mxu1 %vm398_vm0, %v3960_v19  ;;  %vm854_vm12 = vcmp.gt.f32.partialorder %v4898_v48, 20.0  ;;  %v1557_v18 = vmul.f32 %v4870_v46, %v1556_v51  ;;  %vm4229_vm13 = vcmp.lt.f32.partialorder %v1558_v44, 0.0004427343  ;;  %v1106_v32 = vadd.f32 1.0, %v1105_v37 }
 0x1c2   : > { %v1123_v6 = vmul.f32 -0.5, %v4888_v25  ;;  %1962 = vmatprep.mubr.bf16.mxu1 %v4841_v16  ;;  %1899 = vmatprep.subr.bf16.mxu0 %v1688_v56  ;;  %v1416_v55 = vsel %vm4221_vm9, %v1413_v57, %v1410_v58  ;;  %v1554_v53 = vmul.f32 0.6931472, %v2539_v14  ;;  %2550 = vlog2.f32 %v1426_v52 }
 0x1c3   : > { %v1570_v59 = vadd.f32 1.0, %v4105_v36  ;;  %v4241_v46 = vsel %vm889_vm4, %v3906_v38, %v1569_v23  ;;  %v4901_v30 = vpack.c.bf16 %v3857_v39, %v3748_v35  ;;  %vm4246_vm15 = vcmp.lt.f32.partialorder %v1108_v50, 0.0004427343  ;;  %v4904_v50 = vld [vmem:[#allocation36_spill] sm:$0xff] }
 0x1c4   : > { %v1250_v51 = vadd.f32 1.0, %v1249_v34  ;;  %v1252_v44 = vand.u32 2147483647, %v4883_v0  ;;  %v1560_v37 = vsel %vm4229_vm13, %v1557_v18, %v1554_v53  ;;  %v1267_v17 = vmul.f32 -0.5, %v4891_v60  ;;  %v2543_v23 = vpop.eup %2542  ;;  %v4905_v34 = vld [vmem:[#allocation23_spill] sm:$0xff] }
 0x1c5   : > { %1900 = vmatpush1.bf16.msra.mxu0 %v4901_v30  ;;  %2552 = vlog2.f32 %v1570_v59  ;;  %v1444_v38 = vadd.f32 1.0, %v4086_v20  ;;  %v1640_v35 = vsel %vm872_vm7, %v4889_v10, %v1416_v55  ;;  %v1656_v39 = vsel %vm888_vm8, %v4890_v2, %v1560_v37  ;;  %v2545_v41 = vpop.eup %2544 }
 0x1c6   : > { %v1107_v58 = vmul.f32 %v4879_v26, %v1106_v32  ;;  %v1124_v24 = vadd.f32 1.0, %v1123_v6  ;;  %vm840_vm1 = vcmp.gt.f32.partialorder %v4904_v50, 20.0  ;;  %vm856_vm2 = vcmp.gt.f32.partialorder %v4905_v34, 20.0 }
 0x1c7   : > { %v1690_v56 = vpack.c.bf16 %v1656_v39, %v1640_v35  ;;  %v1104_v57 = vmul.f32 0.6931472, %v2543_v23  ;;  %v1126_v42 = vand.u32 2147483647, %v4888_v25  ;;  %2554 = vlog2.f32 %v1444_v38 }
 0x1c8   : > { %v1248_v52 = vmul.f32 0.6931472, %v2545_v41  ;;  %v1251_v10 = vmul.f32 %v4883_v0, %v1250_v51  ;;  %v1429_v14 = vmul.f32 -0.5, %v4081_v62  ;;  %v1588_v2 = vadd.f32 1.0, %v4110_v5  ;;  %v4910_v41 = vld [vmem:[#allocation59_spill] sm:$0xff] }
 0x1c9   : > { %1942 = vmatprep.subr.bf16.mxu1 %v1690_v56  ;;  %v1110_v26 = vsel %vm4246_vm15, %v1107_v58, %v1104_v57  ;;  %vm1253_vm3 = vcmp.lt.f32.partialorder %v1252_v44, 0.0004427343  ;;  %v1268_v18 = vadd.f32 1.0, %v1267_v17  ;;  %v1138_v32 = vadd.f32 1.0, %v4906_v29  ;;  %v4911_v56 = vld [vmem:[#allocation54_spill] sm:$0xff] }
 0x1ca   : > { %v4907_v6 = vpack.c.bf16 %v3871_v1, %v3848_v31  ;;  %v1254_v55 = vsel %vm1253_vm3, %v1251_v10, %v1248_v52  ;;  %v1125_v53 = vmul.f32 %v4888_v25, %v1124_v24  ;;  %v1270_v0 = vand.u32 2147483647, %v4891_v60  ;;  %v2547_v30 = vpop.eup %2546 }
 0x1cb   : > { %v1573_v59 = vmul.f32 -0.5, %v4105_v36  ;;  %v1606_v47 = vsel %vm838_vm10, %v4897_v54, %v1110_v26  ;;  %v1622_v51 = vsel %vm854_vm12, %v4898_v48, %v1254_v55  ;;  %v1432_v44 = vand.u32 2147483647, %v4081_v62  ;;  %v2549_v31 = vpop.eup %2548 }
 0x1cc   : > { %1943 = vmatpush1.bf16.msra.mxu1 %v4907_v6  ;;  %2556 = vlog2.f32 %v1588_v2  ;;  %v1672_v1 = vpack.c.bf16 %v1622_v51, %v1606_v47  ;;  %v1122_v37 = vmul.f32 0.6931472, %v2547_v30  ;;  %v1430_v25 = vadd.f32 1.0, %v1429_v14  ;;  %v4915_v47 = vld [vmem:[#allocation60_spill] sm:$0xff] }
 0x1cd   : > { %2558 = vlog2.f32 %v1138_v32  ;;  %vm874_vm4 = vcmp.gt.f32.partialorder %v3952_v7, 20.0  ;;  %vm890_vm6 = vcmp.gt.f32.partialorder %v3983_v45, 20.0  ;;  %vm4286_vm7 = vcmp.lt.f32.partialorder %v1126_v42, 0.0004427343 }
 0x1ce   : > { %v1266_v54 = vmul.f32 0.6931472, %v2549_v31  ;;  %v1269_v38 = vmul.f32 %v4891_v60, %v1268_v18  ;;  %v1282_v48 = vadd.f32 1.0, %v3828_v3  ;;  %1901 = vmatprep.subr.bf16.mxu0 %v1672_v1  ;;  %v1128_v23 = vsel %vm4286_vm7, %v1125_v53, %v1122_v37 }
 0x1cf   : > { %vm1271_vm8 = vcmp.lt.f32.partialorder %v1270_v0, 0.0004427343  ;;  %v1574_v35 = vadd.f32 1.0, %v1573_v59  ;;  %v1447_v39 = vmul.f32 -0.5, %v4086_v20  ;;  %v4295_v58 = vmul.f32 0.6931472, %v2541_v15  ;;  %v2551_v60 = vpop.eup %2550 }
 0x1d0   : > { %v1272_v24 = vsel %vm1271_vm8, %v1269_v38, %v1266_v54  ;;  %v4912_v57 = vpack.c.bf16 %v4910_v41, %v4911_v56  ;;  %vm4300_vm9 = vcmp.lt.f32.partialorder %v1432_v44, 0.0004427343  ;;  %2560 = vlog2.f32 %v1282_v48  ;;  %v4921_v38 = vld [vmem:[#allocation20_spill] sm:$0xff]  ;;  %v4923_v41 = vld [vmem:[#allocation53_spill] sm:$0xff]  ;;  %v4924_v56 = vld [vmem:[#allocation58_spill] sm:$0xff] }
 0x1d1   : > { %v1608_v52 = vsel %vm840_vm1, %v4904_v50, %v1128_v23  ;;  %v1624_v15 = vsel %vm856_vm2, %v4905_v34, %v1272_v24  ;;  %v1431_v10 = vmul.f32 %v4081_v62, %v1430_v25  ;;  %v1576_v14 = vand.u32 2147483647, %v4105_v36  ;;  %v4922_v24 = vld [vmem:[#allocation47_spill] sm:$0xff] }
 0x1d2   : > { %1902 = vmatpush1.bf16.msra.mxu0 %v4912_v57  ;;  %v1674_v2 = vpack.c.bf16 %v1624_v15, %v1608_v52  ;;  %v1428_v26 = vmul.f32 0.6931472, %v2551_v60  ;;  %v1591_v18 = vmul.f32 -0.5, %v4110_v5  ;;  %v1156_v32 = vadd.f32 1.0, %v3819_v9  ;;  %v2553_v6 = vpop.eup %2552  ;;  %v4949_v57 = vld [vmem:[#allocation57_spill] sm:$0xff] }
 0x1d3   : > { %vm875_vm10 = vcmp.gt.f32.partialorder %v3766_v27, 20.0  ;;  %vm891_vm12 = vcmp.gt.f32.partialorder %v3975_v43, 20.0  ;;  %v1575_v50 = vmul.f32 %v4105_v36, %v1574_v35  ;;  %v1448_v34 = vadd.f32 1.0, %v1447_v39  ;;  %v4916_v36 = vld [vmem:[#allocation22_spill] sm:$0xff] }
 0x1d4   : > { %v1450_v62 = vand.u32 2147483647, %v4086_v20  ;;  %v1300_v55 = vadd.f32 1.0, %v3934_v28  ;;  %vm876_vm13 = vcmp.gt.f32.partialorder %v3955_v13, 20.0  ;;  %1944 = vmatprep.subr.bf16.mxu1 %v1674_v2  ;;  %v1434_v53 = vsel %vm4300_vm9, %v1431_v10, %v1428_v26  ;;  %v2555_v30 = vpop.eup %2554 }
 0x1d5   : > { %2227 = vmatmul.mubr.msk.bf16.vlgmr.msra.gmra.mxu0 %vm398_vm0, %v3960_v19  ;;  %v1572_v0 = vmul.f32 0.6931472, %v2553_v6  ;;  %v1141_v59 = vmul.f32 -0.5, %v4906_v29  ;;  %2562 = vlog2.f32 %v1156_v32  ;;  %v4917_v51 = vpack.c.bf16 %v4915_v47, %v4916_v36 }
 0x1d6   : > { %2005 = vmatprep.mubr.bf16.mxu0 %v4841_v16  ;;  %vm1577_vm15 = vcmp.lt.f32.partialorder %v1576_v14, 0.0004427343  ;;  %v1594_v44 = vand.u32 2147483647, %v4110_v5  ;;  %v1285_v31 = vmul.f32 -0.5, %v3828_v3  ;;  %2564 = vlog2.f32 %v1300_v55 }
 0x1d7   : > { %1945 = vmatpush1.bf16.msra.mxu1 %v4917_v51  ;;  %v4918_v1 = vand.u32 2147483647, %v4091_v4  ;;  %v1578_v25 = vsel %vm1577_vm15, %v1575_v50, %v1572_v0  ;;  %v1446_v17 = vmul.f32 0.6931472, %v2555_v30  ;;  %v1592_v54 = vadd.f32 1.0, %v1591_v18 }
 0x1d8   : > { %vm857_vm2 = vcmp.gt.f32.partialorder %v4921_v38, 20.0  ;;  %v1691_v48 = vpack.c.bf16 %v4241_v46, %v4060_v12  ;;  %v1584_v23 = vmul.f32 %v4091_v4, %v4168_v11  ;;  %v1642_v35 = vsel %vm874_vm4, %v3952_v7, %v1434_v53 }
 0x1d9   : > { %vm4333_vm1 = vcmp.lt.f32.partialorder %v4918_v1, 0.0004427343  ;;  %v1658_v39 = vsel %vm890_vm6, %v3983_v45, %v1578_v25  ;;  %vm841_vm3 = vcmp.gt.f32.partialorder %v4922_v24, 20.0  ;;  %vm842_vm7 = vcmp.gt.f32.partialorder %v4923_v41, 20.0  ;;  %v2557_v46 = vpop.eup %2556  ;;  %v4939_v1 = vld [vmem:[#allocation17_spill] sm:$0xff] }
 0x1da   : > { %vm858_vm8 = vcmp.gt.f32.partialorder %v4924_v56, 20.0  ;;  %2228 = vmatmul.mubr.msk.bf16.vlgmr.msra.gmra.mxu1 %vm398_vm0, %v3960_v19  ;;  %v1692_v12 = vpack.c.bf16 %v1658_v39, %v1642_v35  ;;  %v1449_v4 = vmul.f32 %v4086_v20, %v1448_v34  ;;  %vm4354_vm9 = vcmp.lt.f32.partialorder %v1450_v62, 0.0004427343  ;;  %v2559_v20 = vpop.eup %2558 }
 0x1db   : > { %v1142_v7 = vadd.f32 1.0, %v1141_v59  ;;  %v1587_v45 = vsel %vm4333_vm1, %v1584_v23, %v4295_v58  ;;  %vm4361_vm4 = vcmp.lt.f32.partialorder %v1594_v44, 0.0004427343  ;;  %v1144_v42 = vand.u32 2147483647, %v4906_v29  ;;  %2048 = vmatprep.mubr.bf16.mxu1 %v4841_v16  ;;  %v4946_v23 = vld [vmem:[#allocation19_spill] sm:$0xff] }
 0x1dc   : > { %v1286_v60 = vadd.f32 1.0, %v1285_v31  ;;  %1985 = vmatprep.subr.bf16.mxu0 %v1692_v12  ;;  %v1452_v52 = vsel %vm4354_vm9, %v1449_v4, %v1446_v17  ;;  %v1590_v15 = vmul.f32 0.6931472, %v2557_v46  ;;  %v1593_v10 = vmul.f32 %v4110_v5, %v1592_v54  ;;  %v4938_v31 = vld [vmem:[#allocation13_spill] sm:$0xff] }
 0x1dd   : > { %v1159_v14 = vmul.f32 -0.5, %v3819_v9  ;;  %v4929_v58 = vand.u32 2147483647, %v3753_v40  ;;  %vm892_vm15 = vcmp.gt.f32.partialorder %v3993_v21, 20.0  ;;  %1986 = vmatpush1.bf16.msra.mxu0 %v1691_v48  ;;  %v1140_v16 = vmul.f32 0.6931472, %v2559_v20  ;;  %v2561_v34 = vpop.eup %2560 }
 0x1de   : > { %v1288_v26 = vand.u32 2147483647, %v3828_v3  ;;  %v1303_v18 = vmul.f32 -0.5, %v3934_v28  ;;  %v4932_v5 = vsel %vm4024_vm11, %v4029_v49, %v4042_v22  ;;  %v1659_v32 = vsel %vm891_vm12, %v3975_v43, %v1587_v45  ;;  %v4945_v48 = vld [vmem:[#allocation10_spill] sm:$0xff]  ;;  %v4951_v20 = vld [vmem:[#allocation51_spill] sm:$0xff] }
 0x1df   : > { %vm4373_vm6 = vcmp.lt.f32.partialorder %v4929_v58, 0.0004427343  ;;  %v1643_v40 = vsel %vm875_vm10, %v3766_v27, %v4932_v5  ;;  %v1596_v6 = vsel %vm4361_vm4, %v1593_v10, %v1590_v15  ;;  %v1143_v50 = vmul.f32 %v4906_v29, %v1142_v7  ;;  %v4458_v58 = vpop.permute.xlu0 %1699 }
 0x1e0   : > { %v1644_v63 = vsel %vm876_vm13, %v3955_v13, %v1452_v52  ;;  %v1660_v49 = vsel %vm892_vm15, %v3993_v21, %v1596_v6  ;;  %vm4398_vm11 = vcmp.lt.f32.partialorder %v1144_v42, 0.0004427343  ;;  %v1287_v27 = vmul.f32 %v3828_v3, %v1286_v60  ;;  %v4935_v21 = vld [vmem:[#allocation8_spill] sm:$0xff] }
 0x1e1   : > { %v1694_v62 = vpack.c.bf16 %v1660_v49, %v1644_v63  ;;  %v1146_v43 = vsel %vm4398_vm11, %v1143_v50, %v1140_v16  ;;  %v1284_v55 = vmul.f32 0.6931472, %v2561_v34  ;;  %v1160_v53 = vadd.f32 1.0, %v1159_v14 }
 0x1e2   : > { %v1693_v29 = vpack.c.bf16 %v1659_v32, %v1643_v40  ;;  %vm1289_vm10 = vcmp.lt.f32.partialorder %v1288_v26, 0.0004427343  ;;  %v1162_v0 = vand.u32 2147483647, %v3819_v9  ;;  %v1304_v59 = vadd.f32 1.0, %v1303_v18  ;;  %v2563_v51 = vpop.eup %2562  ;;  %v4461_v18 = vpop.permute.xlu1 %1704 }
 0x1e3   : > { %v1149_v13 = vmul.f32 0.6931472, %v3946_v8  ;;  %v4936_v30 = vsel %vm3922_vm5, %v3914_v61, %v4935_v21  ;;  %2028 = vmatprep.subr.bf16.mxu1 %v1694_v62  ;;  %v1290_v47 = vsel %vm1289_vm10, %v1287_v27, %v1284_v55  ;;  %v1306_v36 = vand.u32 2147483647, %v3934_v28  ;;  %v4941_v8 = vld [vmem:[#allocation16_spill] sm:$0xff] }
 0x1e4   : > { %v1625_v3 = vsel %vm857_vm2, %v4921_v38, %v4936_v30  ;;  %v4940_v37 = vsel %vm3884_vm14, %v4938_v31, %v4939_v1  ;;  %v4942_v61 = vand.u32 2147483647, %v4941_v8  ;;  %2029 = vmatpush1.bf16.msra.mxu1 %v1693_v29  ;;  %v1610_v17 = vsel %vm842_vm7, %v4923_v41, %v1146_v43  ;;  %v2565_v38 = vpop.eup %2564  ;;  %v4947_v41 = vld [vmem:[#allocation15_spill] sm:$0xff] }
 0x1e5   : > { %v1609_v33 = vsel %vm841_vm3, %v4922_v24, %v4940_v37  ;;  %v1626_v54 = vsel %vm858_vm8, %v4924_v56, %v1290_v47  ;;  %v1158_v24 = vmul.f32 0.6931472, %v2563_v51  ;;  %v1161_v12 = vmul.f32 %v3819_v9, %v1160_v53  ;;  %v4948_v56 = vld [vmem:[#allocation56_spill] sm:$0xff]  ;;  %v4950_v9 = vld [vmem:[#allocation61_spill] sm:$0xff] }
 0x1e6   : > { %vm4426_vm5 = vcmp.lt.f32.partialorder %v4942_v61, 0.0004427343  ;;  %v1676_v39 = vpack.c.bf16 %v1626_v54, %v1610_v17  ;;  %v1675_v4 = vpack.c.bf16 %v1625_v3, %v1609_v33  ;;  %vm1163_vm14 = vcmp.lt.f32.partialorder %v1162_v0, 0.0004427343 }
 0x1e7   : > { %v1299_v35 = vsel %vm4426_vm5, %v4946_v23, %v4945_v48  ;;  %v1302_v11 = vmul.f32 0.6931472, %v2565_v38  ;;  %v1305_v7 = vmul.f32 %v3934_v28, %v1304_v59  ;;  %v1155_v46 = vsel %vm4373_vm6, %v4947_v41, %v1149_v13 }
 0x1e8   : > { %vm859_vm12 = vcmp.gt.f32.partialorder %v4948_v56, 20.0  ;;  %1987 = vmatprep.subr.bf16.mxu0 %v1676_v39  ;;  %v1164_v45 = vsel %vm1163_vm14, %v1161_v12, %v1158_v24  ;;  %vm1307_vm13 = vcmp.lt.f32.partialorder %v1306_v36, 0.0004427343  ;;  %vm844_vm1 = vcmp.gt.f32.partialorder %v4949_v57, 20.0 }
 0x1e9   : > { %v1627_v42 = vsel %vm859_vm12, %v4948_v56, %v1299_v35  ;;  %vm860_vm2 = vcmp.gt.f32.partialorder %v4950_v9, 20.0  ;;  %v1308_v60 = vsel %vm1307_vm13, %v1305_v7, %v1302_v11  ;;  %1988 = vmatpush1.bf16.msra.mxu0 %v1675_v4  ;;  %vm843_vm3 = vcmp.gt.f32.partialorder %v4951_v20, 20.0 }
 0x1ea   : > { %v1612_v28 = vsel %vm844_vm1, %v4949_v57, %v1164_v45  ;;  %v1628_v52 = vsel %vm860_vm2, %v4950_v9, %v1308_v60  ;;  %v1611_v15 = vsel %vm843_vm3, %v4951_v20, %v1155_v46 }
 0x1eb   : > { %v1678_v10 = vpack.c.bf16 %v1628_v52, %v1612_v28  ;;  %v1677_v14 = vpack.c.bf16 %v1627_v42, %v1611_v15 }
 0x1ec   : > { %2229 = vmatmul.mubr.msk.bf16.vlgmr.msra.gmra.mxu0 %vm398_vm0, %v3960_v19 }
 0x1ed   : > { %2030 = vmatprep.subr.bf16.mxu1 %v1678_v10 }
 0x1ee   : > { %2031 = vmatpush1.bf16.msra.mxu1 %v1677_v14 }
 0x1f1   : > { %2230 = vmatmul.mubr.msk.bf16.vlgmr.msra.gmra.mxu1 %vm398_vm0, %v3960_v19 }
 0x255   : > { %v1749_v2 = vpop.f32.mrf.mxu0 }
 0x256   : > { %v1750_v16 = vadd.f32 %v1749_v2, %v4458_v58 }
 0x257   : > { %v1751_v26 = vpop.f32.mrf.mxu0 }
 0x258   : > { %2059 = vst [vmem:[%s4463_s25] sm:$0xff] %v1750_v16  ;;  %v1752_v19 = vadd.f32 %v1751_v26, %v4458_v58 }
 0x259   : > { %v1792_v5 = vpop.f32.mrf.mxu1  ;;  %v1753_v40 = vpop.f32.mrf.mxu0 }
 0x25a   : > { %v1793_v32 = vadd.f32 %v1792_v5, %v4458_v58  ;;  %2060 = vst [vmem:[%s4463_s25 + $0x8] sm:$0xff] %v1752_v19  ;;  %v1754_v6 = vadd.f32 %v1753_v40, %v4461_v18 }
 0x25b   : > { %v1794_v50 = vpop.f32.mrf.mxu1  ;;  %v1755_v34 = vpop.f32.mrf.mxu0 }
 0x25c   : > { %2061 = vst [vmem:[%s4463_s25 + $0x10] sm:$0xff] %v1793_v32  ;;  %v1795_v63 = vadd.f32 %v1794_v50, %v4458_v58  ;;  %2075 = vst [vmem:[%s4463_s25 + $0x80] sm:$0xff] %v1754_v6  ;;  %v1756_v49 = vadd.f32 %v1755_v34, %v4461_v18 }
 0x25d   : > { %v1796_v22 = vpop.f32.mrf.mxu1 }
 0x25e   : > { %2062 = vst [vmem:[%s4463_s25 + $0x18] sm:$0xff] %v1795_v63  ;;  %v1797_v27 = vadd.f32 %v1796_v22, %v4461_v18  ;;  %2076 = vst [vmem:[%s4463_s25 + $0x88] sm:$0xff] %v1756_v49 }
 0x25f   : > { %v1798_v62 = vpop.f32.mrf.mxu1 }
 0x260   : > { %2077 = vst [vmem:[%s4463_s25 + $0x90] sm:$0xff] %v1797_v27  ;;  %v1799_v43 = vadd.f32 %v1798_v62, %v4461_v18 }
 0x262   : > { %2078 = vst [vmem:[%s4463_s25 + $0x98] sm:$0xff] %v1799_v43 }
 0x27a   : > { %v1835_v55 = vpop.f32.mrf.mxu0 }
 0x27b   : > { %v1836_v53 = vadd.f32 %v1835_v55, %v4458_v58 }
 0x27c   : > { %v1837_v29 = vpop.f32.mrf.mxu0 }
 0x27d   : > { %2063 = vst [vmem:[%s4463_s25 + $0x20] sm:$0xff] %v1836_v53  ;;  %v1838_v0 = vadd.f32 %v1837_v29, %v4458_v58 }
 0x27e   : > { %v1839_v59 = vpop.f32.mrf.mxu0 }
 0x27f   : > { %2064 = vst [vmem:[%s4463_s25 + $0x28] sm:$0xff] %v1838_v0  ;;  %v1840_v13 = vadd.f32 %v1839_v59, %v4461_v18 }
 0x280   : > { %v1841_v30 = vpop.f32.mrf.mxu0 }
 0x281   : > { %v1878_v21 = vpop.f32.mrf.mxu1  ;;  %2079 = vst [vmem:[%s4463_s25 + $0xa0] sm:$0xff] %v1840_v13  ;;  %v1842_v47 = vadd.f32 %v1841_v30, %v4461_v18 }
 0x282   : > { %v1879_v3 = vadd.f32 %v1878_v21, %v4458_v58 }
 0x283   : > { %v1880_v36 = vpop.f32.mrf.mxu1  ;;  %2080 = vst [vmem:[%s4463_s25 + $0xa8] sm:$0xff] %v1842_v47 }
 0x284   : > { %2065 = vst [vmem:[%s4463_s25 + $0x30] sm:$0xff] %v1879_v3  ;;  %v1881_v51 = vadd.f32 %v1880_v36, %v4458_v58 }
 0x285   : > { %v1882_v44 = vpop.f32.mrf.mxu1 }
 0x286   : > { %2066 = vst [vmem:[%s4463_s25 + $0x38] sm:$0xff] %v1881_v51  ;;  %v1883_v31 = vadd.f32 %v1882_v44, %v4461_v18 }
 0x287   : > { %v1884_v1 = vpop.f32.mrf.mxu1 }
 0x288   : > { %2081 = vst [vmem:[%s4463_s25 + $0xb0] sm:$0xff] %v1883_v31  ;;  %v1885_v37 = vadd.f32 %v1884_v1, %v4461_v18 }
 0x28a   : > { %2082 = vst [vmem:[%s4463_s25 + $0xb8] sm:$0xff] %v1885_v37 }
 0x295   : > { %v1921_v33 = vpop.f32.mrf.mxu0 }
 0x296   : > { %v1922_v8 = vadd.f32 %v1921_v33, %v4458_v58 }
 0x297   : > { %v1923_v61 = vpop.f32.mrf.mxu0 }
 0x298   : > { %2067 = vst [vmem:[%s4463_s25 + $0x40] sm:$0xff] %v1922_v8  ;;  %v1924_v25 = vadd.f32 %v1923_v61, %v4458_v58 }
 0x299   : > { %v1925_v17 = vpop.f32.mrf.mxu0 }
 0x29a   : > { %v1964_v54 = vpop.f32.mrf.mxu1  ;;  %2068 = vst [vmem:[%s4463_s25 + $0x48] sm:$0xff] %v1924_v25  ;;  %v1926_v38 = vadd.f32 %v1925_v17, %v4461_v18 }
 0x29b   : > { %v1965_v48 = vadd.f32 %v1964_v54, %v4458_v58  ;;  %v1927_v23 = vpop.f32.mrf.mxu0 }
 0x29c   : > { %v1966_v35 = vpop.f32.mrf.mxu1  ;;  %2083 = vst [vmem:[%s4463_s25 + $0xc0] sm:$0xff] %v1926_v38  ;;  %v1928_v39 = vadd.f32 %v1927_v23, %v4461_v18 }
 0x29d   : > { %2069 = vst [vmem:[%s4463_s25 + $0x50] sm:$0xff] %v1965_v48  ;;  %v1967_v24 = vadd.f32 %v1966_v35, %v4458_v58 }
 0x29e   : > { %v1968_v12 = vpop.f32.mrf.mxu1  ;;  %2084 = vst [vmem:[%s4463_s25 + $0xc8] sm:$0xff] %v1928_v39 }
 0x29f   : > { %2070 = vst [vmem:[%s4463_s25 + $0x58] sm:$0xff] %v1967_v24  ;;  %v1969_v4 = vadd.f32 %v1968_v12, %v4461_v18 }
 0x2a0   : > { %v1970_v11 = vpop.f32.mrf.mxu1 }
 0x2a1   : > { %2085 = vst [vmem:[%s4463_s25 + $0xd0] sm:$0xff] %v1969_v4  ;;  %v1971_v7 = vadd.f32 %v1970_v11, %v4461_v18 }
 0x2a3   : > { %2086 = vst [vmem:[%s4463_s25 + $0xd8] sm:$0xff] %v1971_v7 }
 0x2ac   : > { %v2007_v41 = vpop.f32.mrf.mxu0 }
 0x2ad   : > { %v2008_v46 = vadd.f32 %v2007_v41, %v4458_v58 }
 0x2ae   : > { %v2009_v56 = vpop.f32.mrf.mxu0 }
 0x2af   : > { %2071 = vst [vmem:[%s4463_s25 + $0x60] sm:$0xff] %v2008_v46  ;;  %v2010_v45 = vadd.f32 %v2009_v56, %v4458_v58 }
 0x2b0   : > { %v2011_v57 = vpop.f32.mrf.mxu0 }
 0x2b1   : > { %v2050_v42 = vpop.f32.mrf.mxu1  ;;  %2072 = vst [vmem:[%s4463_s25 + $0x68] sm:$0xff] %v2010_v45  ;;  %v2012_v9 = vadd.f32 %v2011_v57, %v4461_v18 }
 0x2b2   : > { %v2051_v60 = vadd.f32 %v2050_v42, %v4458_v58  ;;  %v2013_v20 = vpop.f32.mrf.mxu0 }
 0x2b3   : > { %v2052_v28 = vpop.f32.mrf.mxu1  ;;  %2087 = vst [vmem:[%s4463_s25 + $0xe0] sm:$0xff] %v2012_v9  ;;  %v2014_v52 = vadd.f32 %v2013_v20, %v4461_v18 }
 0x2b4   : > { %2073 = vst [vmem:[%s4463_s25 + $0x70] sm:$0xff] %v2051_v60  ;;  %v2053_v15 = vadd.f32 %v2052_v28, %v4458_v58 }
 0x2b5   : > { %v2054_v10 = vpop.f32.mrf.mxu1  ;;  %2088 = vst [vmem:[%s4463_s25 + $0xe8] sm:$0xff] %v2014_v52 }
 0x2b6   : > { %2074 = vst [vmem:[%s4463_s25 + $0x78] sm:$0xff] %v2053_v15  ;;  %v2055_v14 = vadd.f32 %v2054_v10, %v4461_v18 }
 0x2b7   : > { %v2056_v2 = vpop.f32.mrf.mxu1 }
 0x2b8   : > { %2089 = vst [vmem:[%s4463_s25 + $0xf0] sm:$0xff] %v2055_v14  ;;  %v2057_v58 = vadd.f32 %v2056_v2, %v4461_v18 }
 0x2ba   : > { %2090 = vst [vmem:[%s4463_s25 + $0xf8] sm:$0xff] %v2057_v58 }
 0x2bb   : > { %2607 = shalt.err (!%p2604_p6)
}
 0x2bc   : > { %s2608_s16 = scalar_lea.hbm %s4530_s9, 4096  ;;  %s2612_s24 = scalar_lea.hbm %s4588_s5, 8192 }
 0x2bd   : > { %p2609_p7 = scmp.ne.s32.totalorder %s4530_s9, %s2608_s16  ;;  %p2613_p13 = scmp.lt.s32.totalorder %s4530_s9, %s4588_s5 }
 0x2be   : > { %p2614_p2 = scmp.lt.s32.totalorder %s2612_s24, %s2608_s16 }
 0x2bf   : > { %p2610_p10 = pnand %p2609_p7, %p2764_p9 }
 0x2c0   : > { %p2615_p8 = por %p2614_p2, %p2613_p13 }
 0x2c1   : > { %p2611_p4 = pneg %p2610_p10 }
 0x2c3   : > { %p2616_p12 = pnand %p2615_p8, %p2611_p4 }
 0x2c5   : > { %2619 = shalt.err (!%p2616_p12)
}
 0x2c6   : > { %s2681_s10 = smov 2048   ;;  %s2682_s28 = smov 128  }
 0x2c7   : > { %2240 = dma.vmem_to_hbm [thread:$0]  (%p2764_p9), %s4532_s29, 4096, %s4530_s9, %s2092_s21, %s2681_s10, %s2681_s10, %s2682_s28  }
 0x2c8 PF: > { %s2122_s12 = sand.u32 1, %s2654_s18   ;;  %p4952_p0 = scmp.ge.s32.totalorder %s2674_s23, 2 }
 0x2c9   : > { %s2123_s13 = scalar_lea.sflag [#allocation4], %s2122_s12 }
 0x2ca   : > { %p2247_p1 = pnand %p4952_p0, %p2771_p11 }
 0x2cc   : > { %p2248_p3 = pneg %p2247_p1 }
 0x2ce   : > { %2649 = dma.done.wait (%p2248_p3), %s2123_s13, 4096  }
 0x2cf   : > { %2651 = vsyncadd (%p2248_p3), %s2123_s13, 4294963200  ;;  %s21_s23 = sadd.s32 1, %s2674_s23   ;;  %s4953_s18 = smov %s2658_s19 }
 0x2d0   : > { %p18_p5 = scmp.ge.s32.totalorder %s21_s23, 4   ;;  %s4954_s19 = smov %s2662_s20 }
 0x2d1   : > { %s4955_s20 = smov %s2769_s7  ;;  %s4956_s21 = smov %s2670_s22 }
 0x2d2   : > { %s4957_s22 = smov %s4959_s26  ;;  %20 = sbr.rel (!%p18_p5) target bundleno = 6 (0x6), region = 85 }
 0x2d7   :  { %2128 = vsyncpa [#allocation3], 1 }
 0x2d8   :  { %2130 = vsyncpa [#allocation3 + $0x1], 1 }
 0x2d9   :  { %2131 = vsyncpa [#allocation4], 1 }
 0x2da   :  { %2133 = vsyncpa [#allocation4 + $0x1], 1 }

</bundles_post_ra>
